<compile_context>
chip_gen: v5e
topology: v5e:2x2
jax: 0.10.0
libtpu: 0.0.40
codegen_flags: <defaults>
</compile_context>

<pallas_src>
import jax
import jax.numpy as jnp
from jax import lax
from jax.experimental import pallas as pl
from jax.experimental.pallas import tpu as pltpu


# ---------------------------------------------------------------------------
# Fused Pallas kernel (one grid step = one image)
# ---------------------------------------------------------------------------

def _make_block_kernel(H, W, stride, has_shortcut):
    Ho = (H + 2 - 3) // stride + 1
    Wo = (W + 2 - 3) // stride + 1
    # Contract the minor (channel) dim of both operands -> channels-first (Cout, pixels).
    _CF_DIMS = (((1,), (1,)), ((), ()))

    def kernel(*refs):
        if has_shortcut:
            (x_ref, w1_ref, s1_ref, b1_ref, w2_ref, s2_ref, b2_ref,
             w3t_ref, s3_ref, b3_ref, wsct_ref, ssc_ref, bsc_ref,
             o_ref, xp_ref) = refs
        else:
            (x_ref, w1_ref, s1_ref, b1_ref, w2_ref, s2_ref, b2_ref,
             w3t_ref, s3_ref, b3_ref, o_ref, xp_ref) = refs
            wsct_ref = ssc_ref = bsc_ref = None

        Cmid = w1_ref.shape[1]

        # ---- stage 1: 1x1 expand conv + BN1 + ReLU (pixels-as-rows matmul) ----
        x_cl = x_ref[0]                                              # (H*W, Cin)
        t1 = jnp.dot(x_cl, w1_ref[...], preferred_element_type=jnp.float32)
        t1 = jnp.maximum(t1 * s1_ref[...] + b1_ref[...], 0.0)        # (H*W, Cmid)

        # ---- stage 2: depthwise 3x3 (pad=1, stride) + BN2 + ReLU ----
        # Halo handled entirely in VMEM: zero the padded scratch, write the interior.
        xp_ref[...] = jnp.zeros_like(xp_ref)
        xp_ref[1:H + 1, 1:W + 1, :] = t1.reshape(H, W, Cmid)
        acc = jnp.zeros((Ho, Wo, Cmid), jnp.float32)
        for kh in range(3):
            for kw in range(3):
                if stride == 1:
                    win = xp_ref[kh:kh + Ho, kw:kw + Wo, :]
                else:
                    # direct strided output: read the 9 windows at stride offsets
                    win = xp_ref[pl.ds(kh, Ho, stride), pl.ds(kw, Wo, stride), :]
                acc = acc + win * w2_ref[kh * 3 + kw, :]
        t2 = jnp.maximum(acc * s2_ref[0] + b2_ref[0], 0.0)           # (Ho, Wo, Cmid)
        t2 = t2.reshape(Ho * Wo, Cmid)

        # ---- stage 3: 1x1 projection + BN3 (+ conv/BN shortcut), channels-first out ----
        y = lax.dot_general(w3t_ref[...], t2, _CF_DIMS,
                            preferred_element_type=jnp.float32)      # (Cout, Ho*Wo)
        y = y * s3_ref[...] + b3_ref[...]
        if has_shortcut:
            sc = lax.dot_general(wsct_ref[...], x_cl, _CF_DIMS,
                                 preferred_element_type=jnp.float32)  # (Cout, H*W)
            y = y + sc * ssc_ref[...] + bsc_ref[...]
        o_ref[0] = y                                                  # lane-dense store

    return kernel, Ho, Wo


# ---------------------------------------------------------------------------
# Block forward (single pallas_call)
# ---------------------------------------------------------------------------

def block_forward(x_nchw, params, stride, in_planes, out_planes):
    B, Cin, H, W = x_nchw.shape
    Cmid = params["w1"].shape[1]
    Cout = params["w3"].shape[1]
    has_shortcut = (stride == 1 and in_planes != out_planes)

    kernel, Ho, Wo = _make_block_kernel(H, W, stride, has_shortcut)

    # Input: NCHW -> (B, H*W, Cin) channels-last rows (the only layout copy; it is the
    # cheapest tensor in the block).  Output comes back channels-first, so only a free
    # reshape is needed on the way out.
    x_cl = jnp.transpose(x_nchw, (0, 2, 3, 1)).reshape(B, H * W, Cin).astype(jnp.float32)

    w1 = params["w1"]                                    # (Cin, Cmid)
    s1 = params["s1"].reshape(1, Cmid)
    b1 = params["b1"].reshape(1, Cmid)
    w2 = params["w2"]                                    # (9, Cmid), [kh*3+kw, c]
    s2 = params["s2"].reshape(1, Cmid)
    b2 = params["b2"].reshape(1, Cmid)
    w3t = jnp.transpose(params["w3"])                    # (Cout, Cmid)
    s3 = params["s3"].reshape(Cout, 1)
    b3 = params["b3"].reshape(Cout, 1)

    inputs = [x_cl, w1, s1, b1, w2, s2, b2, w3t, s3, b3]
    if has_shortcut:
        inputs += [jnp.transpose(params["wsc"]),         # (Cout, Cin)
                   params["ssc"].reshape(Cout, 1),
                   params["bsc"].reshape(Cout, 1)]

    def _full_spec(shape):
        nd = len(shape)
        return pl.BlockSpec(shape, lambda b, _nd=nd: (0,) * _nd)

    in_specs = [pl.BlockSpec((1, H * W, Cin), lambda b: (b, 0, 0))]
    in_specs += [_full_spec(a.shape) for a in inputs[1:]]
    out_specs = pl.BlockSpec((1, Cout, Ho * Wo), lambda b: (b, 0, 0))

    out = pl.pallas_call(
        kernel,
        out_shape=jax.ShapeDtypeStruct((B, Cout, Ho * Wo), jnp.float32),
        grid=(B,),
        in_specs=in_specs,
        out_specs=out_specs,
        scratch_shapes=[pltpu.VMEM((H + 2, W + 2, Cmid), jnp.float32)],
        compiler_params=pltpu.CompilerParams(
            dimension_semantics=("parallel",),           # shard batch across TCs (v7x)
            vmem_limit_bytes=32 * 1024 * 1024,
        ),
    )(*inputs)

    return out.reshape(B, Cout, Ho, Wo)                  # free reshape, already NCHW


# ---------------------------------------------------------------------------
# Parameters
# ---------------------------------------------------------------------------

def _fold_bn(gamma, beta, mean, var, eps=1e-5):
    scale = gamma / jnp.sqrt(var + eps)
    bias = beta - mean * scale
    return scale, bias


def init_params(key, ch_in, ch_mid, ch_out, has_shortcut):
    ks = jax.random.split(key, 8)

    def bn(k, c):
        k1, k2, k3, k4 = jax.random.split(k, 4)
        gamma = 1.0 + 0.1 * jax.random.normal(k1, (c,), jnp.float32)
        beta = 0.1 * jax.random.normal(k2, (c,), jnp.float32)
        mean = 0.1 * jax.random.normal(k3, (c,), jnp.float32)
        var = 1.0 + 0.1 * jax.random.uniform(k4, (c,), jnp.float32)
        return _fold_bn(gamma, beta, mean, var)

    p = {}
    p["w1"] = 0.1 * jax.random.normal(ks[0], (ch_in, ch_mid), jnp.float32)   # conv1
    p["s1"], p["b1"] = bn(ks[1], ch_mid)
    p["w2"] = 0.1 * jax.random.normal(ks[2], (9, ch_mid), jnp.float32)       # dw conv2
    p["s2"], p["b2"] = bn(ks[3], ch_mid)
    p["w3"] = 0.1 * jax.random.normal(ks[4], (ch_mid, ch_out), jnp.float32)  # conv3
    p["s3"], p["b3"] = bn(ks[5], ch_out)
    if has_shortcut:
        p["wsc"] = 0.1 * jax.random.normal(ks[6], (ch_in, ch_out), jnp.float32)
        p["ssc"], p["bsc"] = bn(ks[7], ch_out)
    return p


# ---------------------------------------------------------------------------
# Pure-JAX reference (for correctness check)
# ---------------------------------------------------------------------------

def reference_forward(x_nchw, params, stride, in_planes, out_planes):
    x = x_nchw.astype(jnp.float32)
    Cmid = params["w1"].shape[1]

    def conv(v, w, s=1, pad=0, groups=1):
        return lax.conv_general_dilated(
            v, w, (s, s), [(pad, pad), (pad, pad)],
            dimension_numbers=("NCHW", "OIHW", "NCHW"),
            feature_group_count=groups)

    def bn(v, sc, bi):
        return v * sc[None, :, None, None] + bi[None, :, None, None]

    w1 = params["w1"].T[:, :, None, None]
    w2 = params["w2"].reshape(3, 3, Cmid).transpose(2, 0, 1)[:, None, :, :]
    w3 = params["w3"].T[:, :, None, None]

    t = jax.nn.relu(bn(conv(x, w1), params["s1"], params["b1"]))
    t = jax.nn.relu(bn(conv(t, w2, s=stride, pad=1, groups=Cmid), params["s2"], params["b2"]))
    out = bn(conv(t, w3), params["s3"], params["b3"])
    if stride == 1 and in_planes != out_planes:
        wsc = params["wsc"].T[:, :, None, None]
        out = out + bn(conv(x, wsc), params["ssc"], params["bsc"])
    return out


# ---------------------------------------------------------------------------

if __name__ == "__main__":
    def run_case(key, B, H, W, in_planes, out_planes, expansion, stride):
        ch_in, ch_mid, ch_out = in_planes, expansion * in_planes, out_planes
        kx, kp = jax.random.split(key)
        x = jax.random.normal(kx, (B, ch_in, H, W), jnp.float32)   # NCHW
        has_shortcut = (stride == 1 and in_planes != out_planes)
        params = init_params(kp, ch_in, ch_mid, ch_out, has_shortcut)

        out = jax.block_until_ready(
            block_forward(x, params, stride, in_planes, out_planes))
        ref = jax.block_until_ready(
            reference_forward(x, params, stride, in_planes, out_planes))

        Ho = (H + 2 - 3) // stride + 1
        Wo = (W + 2 - 3) // stride + 1
        assert out.shape == ref.shape == (B, ch_out, Ho, Wo), (out.shape, ref.shape)
        max_diff = float(jnp.max(jnp.abs(out - ref)))
        assert max_diff < 1e-2, f"mismatch vs reference: max |diff| = {max_diff}"

    key = jax.random.PRNGKey(0)
    k1, k2 = jax.random.split(key)
    # shortcut path: stride=1, in_planes != out_planes  (conv+BN shortcut + residual add)
    run_case(k1, B=2, H=16, W=16, in_planes=8, out_planes=16, expansion=4, stride=1)
    # plain path: stride=1, in_planes == out_planes (per the module spec: no residual add)
    run_case(k2, B=2, H=16, W=16, in_planes=16, out_planes=16, expansion=2, stride=1)

    print("KERNEL_OK")
</pallas_src>

<mosaic_0001>
module attributes {stable_mosaic.version = 11 : i64} {
  func.func @kernel(%arg0: i32, %arg1: memref<1x256x8xf32, #tpu.memory_space<vmem>>, %arg2: memref<8x32xf32, #tpu.memory_space<vmem>>, %arg3: memref<1x32xf32, #tpu.memory_space<vmem>>, %arg4: memref<1x32xf32, #tpu.memory_space<vmem>>, %arg5: memref<9x32xf32, #tpu.memory_space<vmem>>, %arg6: memref<1x32xf32, #tpu.memory_space<vmem>>, %arg7: memref<1x32xf32, #tpu.memory_space<vmem>>, %arg8: memref<16x32xf32, #tpu.memory_space<vmem>>, %arg9: memref<16x1xf32, #tpu.memory_space<vmem>>, %arg10: memref<16x1xf32, #tpu.memory_space<vmem>>, %arg11: memref<16x8xf32, #tpu.memory_space<vmem>>, %arg12: memref<16x1xf32, #tpu.memory_space<vmem>>, %arg13: memref<16x1xf32, #tpu.memory_space<vmem>>, %arg14: memref<1x16x256xf32, #tpu.memory_space<vmem>>, %arg15: memref<18x18x32xf32, #tpu.memory_space<vmem>>) attributes {dimension_semantics = [#tpu.dimension_semantics<parallel>], iteration_bounds = array<i64: 2>, scalar_prefetch = 0 : i64, scratch_operands = 1 : i64, tpu.core_type = #tpu.core_type<tc>, window_params = [{transform_indices = @transform_0, window_bounds = array<i64: 1, 256, 8>}, {pipeline_mode = #tpu.pipeline_mode<synchronous>, transform_indices = @transform_1, window_bounds = array<i64: 8, 32>}, {pipeline_mode = #tpu.pipeline_mode<synchronous>, transform_indices = @transform_2, window_bounds = array<i64: 1, 32>}, {pipeline_mode = #tpu.pipeline_mode<synchronous>, transform_indices = @transform_3, window_bounds = array<i64: 1, 32>}, {pipeline_mode = #tpu.pipeline_mode<synchronous>, transform_indices = @transform_4, window_bounds = array<i64: 9, 32>}, {pipeline_mode = #tpu.pipeline_mode<synchronous>, transform_indices = @transform_5, window_bounds = array<i64: 1, 32>}, {pipeline_mode = #tpu.pipeline_mode<synchronous>, transform_indices = @transform_6, window_bounds = array<i64: 1, 32>}, {pipeline_mode = #tpu.pipeline_mode<synchronous>, transform_indices = @transform_7, window_bounds = array<i64: 16, 32>}, {pipeline_mode = #tpu.pipeline_mode<synchronous>, transform_indices = @transform_8, window_bounds = array<i64: 16, 1>}, {pipeline_mode = #tpu.pipeline_mode<synchronous>, transform_indices = @transform_9, window_bounds = array<i64: 16, 1>}, {pipeline_mode = #tpu.pipeline_mode<synchronous>, transform_indices = @transform_10, window_bounds = array<i64: 16, 8>}, {pipeline_mode = #tpu.pipeline_mode<synchronous>, transform_indices = @transform_11, window_bounds = array<i64: 16, 1>}, {pipeline_mode = #tpu.pipeline_mode<synchronous>, transform_indices = @transform_12, window_bounds = array<i64: 16, 1>}, {transform_indices = @transform_13, window_bounds = array<i64: 1, 16, 256>}]} {
    %c0 = arith.constant 0 : index
    %c0_0 = arith.constant 0 : index
    %c0_1 = arith.constant 0 : index
    %0 = vector.load %arg1[%c0, %c0_0, %c0_1] : memref<1x256x8xf32, #tpu.memory_space<vmem>>, vector<1x256x8xf32>
    %1 = vector.shape_cast %0 : vector<1x256x8xf32> to vector<256x8xf32>
    %c0_2 = arith.constant 0 : index
    %c0_3 = arith.constant 0 : index
    %2 = vector.load %arg2[%c0_2, %c0_3] : memref<8x32xf32, #tpu.memory_space<vmem>>, vector<8x32xf32>
    %cst = arith.constant dense<0.000000e+00> : vector<256x32xf32>
    %3 = tpu.matmul %1, %2, %cst {dimension_numbers = #tpu.dot_dimension_numbers<[1], [0], [0], [1], [0, 0, 1, 1], [], []>} : vector<256x8xf32>, vector<8x32xf32>, vector<256x32xf32> -> vector<256x32xf32>
    %c0_4 = arith.constant 0 : index
    %c0_5 = arith.constant 0 : index
    %4 = vector.load %arg3[%c0_4, %c0_5] : memref<1x32xf32, #tpu.memory_space<vmem>>, vector<1x32xf32>
    %5 = vector.broadcast %4 : vector<1x32xf32> to vector<256x32xf32>
    %6 = arith.mulf %3, %5 : vector<256x32xf32>
    %c0_6 = arith.constant 0 : index
    %c0_7 = arith.constant 0 : index
    %7 = vector.load %arg4[%c0_6, %c0_7] : memref<1x32xf32, #tpu.memory_space<vmem>>, vector<1x32xf32>
    %8 = vector.broadcast %7 : vector<1x32xf32> to vector<256x32xf32>
    %9 = arith.addf %6, %8 : vector<256x32xf32>
    %cst_8 = arith.constant 0.000000e+00 : f32
    %10 = vector.broadcast %cst_8 : f32 to vector<256x32xf32>
    %11 = arith.maximumf %9, %10 : vector<256x32xf32>
    %cst_9 = arith.constant 0.000000e+00 : f32
    %12 = vector.broadcast %cst_9 : f32 to vector<18x18x32xf32>
    %c0_10 = arith.constant 0 : index
    %c0_11 = arith.constant 0 : index
    %c0_12 = arith.constant 0 : index
    %13 = vector.load %arg15[%c0_10, %c0_11, %c0_12] : memref<18x18x32xf32, #tpu.memory_space<vmem>>, vector<18x18x32xf32>
    tpu.vector_store %arg15[%c0_10, %c0_11, %c0_12], %12 {strides = array<i32>} : memref<18x18x32xf32, #tpu.memory_space<vmem>>, vector<18x18x32xf32>,
    %14 = vector.shape_cast %11 : vector<256x32xf32> to vector<16x16x32xf32>
    %c1 = arith.constant 1 : index
    %c1_13 = arith.constant 1 : index
    %c0_14 = arith.constant 0 : index
    %15 = vector.load %arg15[%c1, %c1_13, %c0_14] : memref<18x18x32xf32, #tpu.memory_space<vmem>>, vector<16x16x32xf32>
    tpu.vector_store %arg15[%c1, %c1_13, %c0_14], %14 {strides = array<i32>} : memref<18x18x32xf32, #tpu.memory_space<vmem>>, vector<16x16x32xf32>,
    %cst_15 = arith.constant 0.000000e+00 : f32
    %16 = vector.broadcast %cst_15 : f32 to vector<16x16x32xf32>
    %c0_16 = arith.constant 0 : index
    %c0_17 = arith.constant 0 : index
    %c0_18 = arith.constant 0 : index
    %17 = vector.load %arg15[%c0_16, %c0_17, %c0_18] : memref<18x18x32xf32, #tpu.memory_space<vmem>>, vector<16x16x32xf32>
    %c0_19 = arith.constant 0 : index
    %c0_20 = arith.constant 0 : index
    %18 = vector.load %arg5[%c0_19, %c0_20] : memref<9x32xf32, #tpu.memory_space<vmem>>, vector<1x32xf32>
    %19 = vector.shape_cast %18 : vector<1x32xf32> to vector<32xf32>
    %20 = vector.shape_cast %19 : vector<32xf32> to vector<1x1x32xf32>
    %21 = vector.broadcast %20 : vector<1x1x32xf32> to vector<16x16x32xf32>
    %22 = arith.mulf %17, %21 : vector<16x16x32xf32>
    %23 = arith.addf %16, %22 : vector<16x16x32xf32>
    %c0_21 = arith.constant 0 : index
    %c1_22 = arith.constant 1 : index
    %c0_23 = arith.constant 0 : index
    %24 = vector.load %arg15[%c0_21, %c1_22, %c0_23] : memref<18x18x32xf32, #tpu.memory_space<vmem>>, vector<16x16x32xf32>
    %c1_24 = arith.constant 1 : index
    %c0_25 = arith.constant 0 : index
    %25 = vector.load %arg5[%c1_24, %c0_25] : memref<9x32xf32, #tpu.memory_space<vmem>>, vector<1x32xf32>
    %26 = vector.shape_cast %25 : vector<1x32xf32> to vector<32xf32>
    %27 = vector.shape_cast %26 : vector<32xf32> to vector<1x1x32xf32>
    %28 = vector.broadcast %27 : vector<1x1x32xf32> to vector<16x16x32xf32>
    %29 = arith.mulf %24, %28 : vector<16x16x32xf32>
    %30 = arith.addf %23, %29 : vector<16x16x32xf32>
    %c0_26 = arith.constant 0 : index
    %c2 = arith.constant 2 : index
    %c0_27 = arith.constant 0 : index
    %31 = vector.load %arg15[%c0_26, %c2, %c0_27] : memref<18x18x32xf32, #tpu.memory_space<vmem>>, vector<16x16x32xf32>
    %c2_28 = arith.constant 2 : index
    %c0_29 = arith.constant 0 : index
    %32 = vector.load %arg5[%c2_28, %c0_29] : memref<9x32xf32, #tpu.memory_space<vmem>>, vector<1x32xf32>
    %33 = vector.shape_cast %32 : vector<1x32xf32> to vector<32xf32>
    %34 = vector.shape_cast %33 : vector<32xf32> to vector<1x1x32xf32>
    %35 = vector.broadcast %34 : vector<1x1x32xf32> to vector<16x16x32xf32>
    %36 = arith.mulf %31, %35 : vector<16x16x32xf32>
    %37 = arith.addf %30, %36 : vector<16x16x32xf32>
    %c1_30 = arith.constant 1 : index
    %c0_31 = arith.constant 0 : index
    %c0_32 = arith.constant 0 : index
    %38 = vector.load %arg15[%c1_30, %c0_31, %c0_32] : memref<18x18x32xf32, #tpu.memory_space<vmem>>, vector<16x16x32xf32>
    %c3 = arith.constant 3 : index
    %c0_33 = arith.constant 0 : index
    %39 = vector.load %arg5[%c3, %c0_33] : memref<9x32xf32, #tpu.memory_space<vmem>>, vector<1x32xf32>
    %40 = vector.shape_cast %39 : vector<1x32xf32> to vector<32xf32>
    %41 = vector.shape_cast %40 : vector<32xf32> to vector<1x1x32xf32>
    %42 = vector.broadcast %41 : vector<1x1x32xf32> to vector<16x16x32xf32>
    %43 = arith.mulf %38, %42 : vector<16x16x32xf32>
    %44 = arith.addf %37, %43 : vector<16x16x32xf32>
    %c1_34 = arith.constant 1 : index
    %c1_35 = arith.constant 1 : index
    %c0_36 = arith.constant 0 : index
    %45 = vector.load %arg15[%c1_34, %c1_35, %c0_36] : memref<18x18x32xf32, #tpu.memory_space<vmem>>, vector<16x16x32xf32>
    %c4 = arith.constant 4 : index
    %c0_37 = arith.constant 0 : index
    %46 = vector.load %arg5[%c4, %c0_37] : memref<9x32xf32, #tpu.memory_space<vmem>>, vector<1x32xf32>
    %47 = vector.shape_cast %46 : vector<1x32xf32> to vector<32xf32>
    %48 = vector.shape_cast %47 : vector<32xf32> to vector<1x1x32xf32>
    %49 = vector.broadcast %48 : vector<1x1x32xf32> to vector<16x16x32xf32>
    %50 = arith.mulf %45, %49 : vector<16x16x32xf32>
    %51 = arith.addf %44, %50 : vector<16x16x32xf32>
    %c1_38 = arith.constant 1 : index
    %c2_39 = arith.constant 2 : index
    %c0_40 = arith.constant 0 : index
    %52 = vector.load %arg15[%c1_38, %c2_39, %c0_40] : memref<18x18x32xf32, #tpu.memory_space<vmem>>, vector<16x16x32xf32>
    %c5 = arith.constant 5 : index
    %c0_41 = arith.constant 0 : index
    %53 = vector.load %arg5[%c5, %c0_41] : memref<9x32xf32, #tpu.memory_space<vmem>>, vector<1x32xf32>
    %54 = vector.shape_cast %53 : vector<1x32xf32> to vector<32xf32>
    %55 = vector.shape_cast %54 : vector<32xf32> to vector<1x1x32xf32>
    %56 = vector.broadcast %55 : vector<1x1x32xf32> to vector<16x16x32xf32>
    %57 = arith.mulf %52, %56 : vector<16x16x32xf32>
    %58 = arith.addf %51, %57 : vector<16x16x32xf32>
    %c2_42 = arith.constant 2 : index
    %c0_43 = arith.constant 0 : index
    %c0_44 = arith.constant 0 : index
    %59 = vector.load %arg15[%c2_42, %c0_43, %c0_44] : memref<18x18x32xf32, #tpu.memory_space<vmem>>, vector<16x16x32xf32>
    %c6 = arith.constant 6 : index
    %c0_45 = arith.constant 0 : index
    %60 = vector.load %arg5[%c6, %c0_45] : memref<9x32xf32, #tpu.memory_space<vmem>>, vector<1x32xf32>
    %61 = vector.shape_cast %60 : vector<1x32xf32> to vector<32xf32>
    %62 = vector.shape_cast %61 : vector<32xf32> to vector<1x1x32xf32>
    %63 = vector.broadcast %62 : vector<1x1x32xf32> to vector<16x16x32xf32>
    %64 = arith.mulf %59, %63 : vector<16x16x32xf32>
    %65 = arith.addf %58, %64 : vector<16x16x32xf32>
    %c2_46 = arith.constant 2 : index
    %c1_47 = arith.constant 1 : index
    %c0_48 = arith.constant 0 : index
    %66 = vector.load %arg15[%c2_46, %c1_47, %c0_48] : memref<18x18x32xf32, #tpu.memory_space<vmem>>, vector<16x16x32xf32>
    %c7 = arith.constant 7 : index
    %c0_49 = arith.constant 0 : index
    %67 = vector.load %arg5[%c7, %c0_49] : memref<9x32xf32, #tpu.memory_space<vmem>>, vector<1x32xf32>
    %68 = vector.shape_cast %67 : vector<1x32xf32> to vector<32xf32>
    %69 = vector.shape_cast %68 : vector<32xf32> to vector<1x1x32xf32>
    %70 = vector.broadcast %69 : vector<1x1x32xf32> to vector<16x16x32xf32>
    %71 = arith.mulf %66, %70 : vector<16x16x32xf32>
    %72 = arith.addf %65, %71 : vector<16x16x32xf32>
    %c2_50 = arith.constant 2 : index
    %c2_51 = arith.constant 2 : index
    %c0_52 = arith.constant 0 : index
    %73 = vector.load %arg15[%c2_50, %c2_51, %c0_52] : memref<18x18x32xf32, #tpu.memory_space<vmem>>, vector<16x16x32xf32>
    %c8 = arith.constant 8 : index
    %c0_53 = arith.constant 0 : index
    %74 = vector.load %arg5[%c8, %c0_53] : memref<9x32xf32, #tpu.memory_space<vmem>>, vector<1x32xf32>
    %75 = vector.shape_cast %74 : vector<1x32xf32> to vector<32xf32>
    %76 = vector.shape_cast %75 : vector<32xf32> to vector<1x1x32xf32>
    %77 = vector.broadcast %76 : vector<1x1x32xf32> to vector<16x16x32xf32>
    %78 = arith.mulf %73, %77 : vector<16x16x32xf32>
    %79 = arith.addf %72, %78 : vector<16x16x32xf32>
    %c0_54 = arith.constant 0 : index
    %c0_55 = arith.constant 0 : index
    %80 = vector.load %arg6[%c0_54, %c0_55] : memref<1x32xf32, #tpu.memory_space<vmem>>, vector<1x32xf32>
    %81 = vector.shape_cast %80 : vector<1x32xf32> to vector<32xf32>
    %82 = vector.shape_cast %81 : vector<32xf32> to vector<1x1x32xf32>
    %83 = vector.broadcast %82 : vector<1x1x32xf32> to vector<16x16x32xf32>
    %84 = arith.mulf %79, %83 : vector<16x16x32xf32>
    %c0_56 = arith.constant 0 : index
    %c0_57 = arith.constant 0 : index
    %85 = vector.load %arg7[%c0_56, %c0_57] : memref<1x32xf32, #tpu.memory_space<vmem>>, vector<1x32xf32>
    %86 = vector.shape_cast %85 : vector<1x32xf32> to vector<32xf32>
    %87 = vector.shape_cast %86 : vector<32xf32> to vector<1x1x32xf32>
    %88 = vector.broadcast %87 : vector<1x1x32xf32> to vector<16x16x32xf32>
    %89 = arith.addf %84, %88 : vector<16x16x32xf32>
    %cst_58 = arith.constant 0.000000e+00 : f32
    %90 = vector.broadcast %cst_58 : f32 to vector<16x16x32xf32>
    %91 = arith.maximumf %89, %90 : vector<16x16x32xf32>
    %92 = vector.shape_cast %91 : vector<16x16x32xf32> to vector<256x32xf32>
    %c0_59 = arith.constant 0 : index
    %c0_60 = arith.constant 0 : index
    %93 = vector.load %arg8[%c0_59, %c0_60] : memref<16x32xf32, #tpu.memory_space<vmem>>, vector<16x32xf32>
    %cst_61 = arith.constant dense<0.000000e+00> : vector<16x256xf32>
    %94 = tpu.matmul %93, %92, %cst_61 {dimension_numbers = #tpu.dot_dimension_numbers<[1], [1], [0], [0], [0, 0, 1, 0], [], []>} : vector<16x32xf32>, vector<256x32xf32>, vector<16x256xf32> -> vector<16x256xf32>
    %c0_62 = arith.constant 0 : index
    %c0_63 = arith.constant 0 : index
    %95 = vector.load %arg9[%c0_62, %c0_63] : memref<16x1xf32, #tpu.memory_space<vmem>>, vector<16x1xf32>
    %96 = vector.broadcast %95 : vector<16x1xf32> to vector<16x256xf32>
    %97 = arith.mulf %94, %96 : vector<16x256xf32>
    %c0_64 = arith.constant 0 : index
    %c0_65 = arith.constant 0 : index
    %98 = vector.load %arg10[%c0_64, %c0_65] : memref<16x1xf32, #tpu.memory_space<vmem>>, vector<16x1xf32>
    %99 = vector.broadcast %98 : vector<16x1xf32> to vector<16x256xf32>
    %100 = arith.addf %97, %99 : vector<16x256xf32>
    %c0_66 = arith.constant 0 : index
    %c0_67 = arith.constant 0 : index
    %101 = vector.load %arg11[%c0_66, %c0_67] : memref<16x8xf32, #tpu.memory_space<vmem>>, vector<16x8xf32>
    %cst_68 = arith.constant dense<0.000000e+00> : vector<16x256xf32>
    %102 = tpu.matmul %101, %1, %cst_68 {dimension_numbers = #tpu.dot_dimension_numbers<[1], [1], [0], [0], [0, 0, 1, 0], [], []>} : vector<16x8xf32>, vector<256x8xf32>, vector<16x256xf32> -> vector<16x256xf32>
    %c0_69 = arith.constant 0 : index
    %c0_70 = arith.constant 0 : index
    %103 = vector.load %arg12[%c0_69, %c0_70] : memref<16x1xf32, #tpu.memory_space<vmem>>, vector<16x1xf32>
    %104 = vector.broadcast %103 : vector<16x1xf32> to vector<16x256xf32>
    %105 = arith.mulf %102, %104 : vector<16x256xf32>
    %106 = arith.addf %100, %105 : vector<16x256xf32>
    %c0_71 = arith.constant 0 : index
    %c0_72 = arith.constant 0 : index
    %107 = vector.load %arg13[%c0_71, %c0_72] : memref<16x1xf32, #tpu.memory_space<vmem>>, vector<16x1xf32>
    %108 = vector.broadcast %107 : vector<16x1xf32> to vector<16x256xf32>
    %109 = arith.addf %106, %108 : vector<16x256xf32>
    %c0_73 = arith.constant 0 : index
    %c0_74 = arith.constant 0 : index
    %c0_75 = arith.constant 0 : index
    %110 = vector.load %arg14[%c0_73, %c0_74, %c0_75] : memref<1x16x256xf32, #tpu.memory_space<vmem>>, vector<1x16x256xf32>
    %111 = vector.shape_cast %110 : vector<1x16x256xf32> to vector<16x256xf32>
    %112 = vector.shape_cast %109 : vector<16x256xf32> to vector<1x16x256xf32>
    tpu.vector_store %arg14[%c0_73, %c0_74, %c0_75], %112 {strides = array<i32>} : memref<1x16x256xf32, #tpu.memory_space<vmem>>, vector<1x16x256xf32>,
    return
  }
  func.func @transform_0(%arg0: i32) -> (i32, i32, i32) {
    %c0_i32 = arith.constant 0 : i32
    %c0_i32_0 = arith.constant 0 : i32
    %c0_i32_1 = arith.constant 0 : i32
    return %arg0, %c0_i32, %c0_i32_0 : i32, i32, i32
  }
  func.func @transform_1(%arg0: i32) -> (i32, i32) {
    %c0_i32 = arith.constant 0 : i32
    %c0_i32_0 = arith.constant 0 : i32
    %c0_i32_1 = arith.constant 0 : i32
    return %c0_i32, %c0_i32_0 : i32, i32
  }
  func.func @transform_2(%arg0: i32) -> (i32, i32) {
    %c0_i32 = arith.constant 0 : i32
    %c0_i32_0 = arith.constant 0 : i32
    %c0_i32_1 = arith.constant 0 : i32
    return %c0_i32, %c0_i32_0 : i32, i32
  }
  func.func @transform_3(%arg0: i32) -> (i32, i32) {
    %c0_i32 = arith.constant 0 : i32
    %c0_i32_0 = arith.constant 0 : i32
    %c0_i32_1 = arith.constant 0 : i32
    return %c0_i32, %c0_i32_0 : i32, i32
  }
  func.func @transform_4(%arg0: i32) -> (i32, i32) {
    %c0_i32 = arith.constant 0 : i32
    %c0_i32_0 = arith.constant 0 : i32
    %c0_i32_1 = arith.constant 0 : i32
    return %c0_i32, %c0_i32_0 : i32, i32
  }
  func.func @transform_5(%arg0: i32) -> (i32, i32) {
    %c0_i32 = arith.constant 0 : i32
    %c0_i32_0 = arith.constant 0 : i32
    %c0_i32_1 = arith.constant 0 : i32
    return %c0_i32, %c0_i32_0 : i32, i32
  }
  func.func @transform_6(%arg0: i32) -> (i32, i32) {
    %c0_i32 = arith.constant 0 : i32
    %c0_i32_0 = arith.constant 0 : i32
    %c0_i32_1 = arith.constant 0 : i32
    return %c0_i32, %c0_i32_0 : i32, i32
  }
  func.func @transform_7(%arg0: i32) -> (i32, i32) {
    %c0_i32 = arith.constant 0 : i32
    %c0_i32_0 = arith.constant 0 : i32
    %c0_i32_1 = arith.constant 0 : i32
    return %c0_i32, %c0_i32_0 : i32, i32
  }
  func.func @transform_8(%arg0: i32) -> (i32, i32) {
    %c0_i32 = arith.constant 0 : i32
    %c0_i32_0 = arith.constant 0 : i32
    %c0_i32_1 = arith.constant 0 : i32
    return %c0_i32, %c0_i32_0 : i32, i32
  }
  func.func @transform_9(%arg0: i32) -> (i32, i32) {
    %c0_i32 = arith.constant 0 : i32
    %c0_i32_0 = arith.constant 0 : i32
    %c0_i32_1 = arith.constant 0 : i32
    return %c0_i32, %c0_i32_0 : i32, i32
  }
  func.func @transform_10(%arg0: i32) -> (i32, i32) {
    %c0_i32 = arith.constant 0 : i32
    %c0_i32_0 = arith.constant 0 : i32
    %c0_i32_1 = arith.constant 0 : i32
    return %c0_i32, %c0_i32_0 : i32, i32
  }
  func.func @transform_11(%arg0: i32) -> (i32, i32) {
    %c0_i32 = arith.constant 0 : i32
    %c0_i32_0 = arith.constant 0 : i32
    %c0_i32_1 = arith.constant 0 : i32
    return %c0_i32, %c0_i32_0 : i32, i32
  }
  func.func @transform_12(%arg0: i32) -> (i32, i32) {
    %c0_i32 = arith.constant 0 : i32
    %c0_i32_0 = arith.constant 0 : i32
    %c0_i32_1 = arith.constant 0 : i32
    return %c0_i32, %c0_i32_0 : i32, i32
  }
  func.func @transform_13(%arg0: i32) -> (i32, i32, i32) {
    %c0_i32 = arith.constant 0 : i32
    %c0_i32_0 = arith.constant 0 : i32
    %c0_i32_1 = arith.constant 0 : i32
    return %arg0, %c0_i32, %c0_i32_0 : i32, i32, i32
  }
}

</mosaic_0001>

<bundles_post_ra>
// kernel: tpu_custom_call.1
= control target key start
LH: loop header
LB: loop body
LE: loop exit
PB: predicated region body
PF: predicated region fallthrough
CT: control target
= control target key end

     0   :  { %s4128_s0 = inlined_call_operand.vmem [shape: f32[2,256,8], index: 0, kind: input, shape index: {}]   ;;  %s4129_s1 = inlined_call_operand.vmem [shape: f32[8,32], index: 1, kind: input, shape index: {}]   ;;  %s4130_s2 = inlined_call_operand.vmem [shape: f32[1,32], index: 2, kind: input, shape index: {}]   ;;  %s4131_s3 = inlined_call_operand.vmem [shape: f32[1,32], index: 3, kind: input, shape index: {}]   ;;  %s4132_s4 = inlined_call_operand.vmem [shape: f32[9,32], index: 4, kind: input, shape index: {}]   ;;  %s4133_s5 = inlined_call_operand.vmem [shape: f32[1,32], index: 5, kind: input, shape index: {}]   ;;  %s4134_s6 = inlined_call_operand.vmem [shape: f32[1,32], index: 6, kind: input, shape index: {}]   ;;  %s4135_s7 = inlined_call_operand.vmem [shape: f32[16,32], index: 7, kind: input, shape index: {}]   ;;  %s4136_s8 = inlined_call_operand.vmem [shape: f32[16,1], index: 8, kind: input, shape index: {}]   ;;  %s4137_s9 = inlined_call_operand.vmem [shape: f32[16,1], index: 9, kind: input, shape index: {}]   ;;  %s4138_s10 = inlined_call_operand.vmem [shape: f32[16,8], index: 10, kind: input, shape index: {}]   ;;  %s4139_s11 = inlined_call_operand.vmem [shape: f32[16,1], index: 11, kind: input, shape index: {}]   ;;  %s4140_s12 = inlined_call_operand.vmem [shape: f32[16,1], index: 12, kind: input, shape index: {}]   ;;  %s4141_s13 = inlined_call_operand.hbm [shape: f32[2,16,256], index: 13, kind: output, shape index: {}]  }
   0x1   :  { %4156 = sst [smem:[#allocation11_spill]] %s4128_s0 }
   0x2   :  { %4157 = sst [smem:[#allocation12_spill]] %s4129_s1 }
   0x3   :  { %4158 = sst [smem:[#allocation13_spill]] %s4130_s2 }
   0x4   :  { %18 = vsyncpa [#allocation4], 0 }
   0x5   :  { %20 = vsyncpa [#allocation4 + $0x1], 0  ;;  %s2577_s25 = smov 0   ;;  %s2579_s26 = smov 0  }
   0x6   :  { %s2581_s27 = smov 0   ;;  %s2583_s28 = smov 0  }
   0x7 LB: > { %s2598_s29 = sadd.s32 4294967295, %s2501_s28   ;;  %s2216_s30 = sadd.s32 4294967294, %s2501_s28   ;;  %s2501_s28 = sphi %s2583_s28, %s4186_s28   ;;  %s2497_s27 = sphi %s2581_s27, %s4185_s27   ;;  %s2493_s26 = sphi %s2579_s26, %s4184_s26   ;;  %s2489_s25 = sphi %s2577_s25, %s4183_s25  }
   0x8   : > { %s2602_s14 = sadd.s32 1, %s2501_s28   ;;  %s311_s15 = sadd.s32 1, %s2497_s27 }
   0x9   : > { %s308_s16 = ssub.s32 %s2501_s28, %s2602_s14  ;;  %p321_p0 = scmp.ne.s32.totalorder %s2497_s27, %s2493_s26 }
   0xa   : > { %p309_p1 = scmp.eq.s32.totalorder %s308_s16, 0  ;;  %p322_p2 = scmp.eq.s32.totalorder %s2598_s29, 1 }
   0xb   : > { %p327_p3 = scmp.ne.s32.totalorder %s2493_s26, %s2489_s25  ;;  %p328_p4 = scmp.eq.s32.totalorder %s2216_s30, 1 }
   0xc   : > { %s2613_s17 = scalar_select %p309_p1, %s2497_s27, %s311_s15  }
   0xd   : > { %p2615_p5 = por %p322_p2, %p321_p0  ;;  %p2619_p6 = por %p328_p4, %p327_p3 }
   0xe   : > { %p2219_p7 = scmp.ge.s32.totalorder %s2501_s28, 1  ;;  %p390_p8 = scmp.lt.s32.totalorder %s2501_s28, 3 }
  0x10   : > { %p391_p9 = pnand %p2219_p7, %p390_p8 }
  0x12   : > { %394 = sbr.rel (%p391_p9) target bundleno = 595 (0x253), region = 72 }
  0x17   : > { %s4161_s1 = sld [smem:[#allocation12_spill]]  ;;  %p434_p10 = scmp.lt.s32.totalorder %s2598_s29, 1  ;;  %vm472_vm0 = vcmask 64512   ;;  %vm786_vm1 = vcmask 261120   ;;  %v2503_v33 = vmov 0.0   ;;  %vm789_vm2 = vcmask 254976  }
  0x18   : > { %s4162_s0 = sld [smem:[#allocation11_spill]]  ;;  %791 = vst.msk [vmem:[#allocation2 + $0x18] sm:$0xff] %vm786_vm1, %v2503_v33  ;;  %v2791_v35 = vld [vmem:[%s4131_s3] ss:$0 sm:$0xff]  ;;  %s2459_s30 = scalar_lea.hbm %s4141_s13, 64 }
  0x19   : > { %s435_s22 = scalar_select %p434_p10, %s2598_s29, 1  ;;  %792 = vst.msk [vmem:[#allocation2 + $0x20] sm:$0xff] %vm786_vm1, %v2503_v33 }
  0x1a   : > { %787 = vst.msk [vmem:[#allocation2] sm:$0xff] %vm786_vm1, %v2503_v33  ;;  %s4163_s2 = sld [smem:[#allocation13_spill]] }
  0x1b   : > { %s2332_s23 = sshll.u32 %s435_s22, 8  ;;  %788 = vst.msk [vmem:[#allocation2 + $0x8] sm:$0xff] %vm786_vm1, %v2503_v33 }
  0x1c   : > { %794 = vst.msk [vmem:[#allocation2 + $0x30] sm:$0xff] %vm786_vm1, %v2503_v33 }
  0x1d   : > { %v471_v0 = vld [vmem:[%s4161_s1] sm:$0xff]  ;;  %795 = vst.msk [vmem:[#allocation2 + $0x38] sm:$0xff] %vm786_vm1, %v2503_v33 }
  0x1e   : > { %584 = vmatpush.msra.mxu0 %v471_v0  ;;  %2334 = vmatpush.msra.mxu2 %v471_v0  ;;  %s2633_s15 = scalar_lea.vmem %s4162_s0, %s2332_s23  ;;  %797 = vst.msk [vmem:[#allocation2 + $0x48] sm:$0xff] %vm786_vm1, %v2503_v33  ;;  %s2333_s23 = sshll.u32 %s2598_s29, 5 }
  0x1f   : > { %2335 = vmatpush.msra.mxu3 %v471_v0  ;;  %v2636_v1 = vld [vmem:[%s2633_s15] sm:$0xff]  ;;  %v2645_v4 = vld [vmem:[%s2633_s15 + $0x8] sm:$0xff]  ;;  %v2654_v7 = vld [vmem:[%s2633_s15 + $0x10] sm:$0xff]  ;;  %798 = vst.msk [vmem:[#allocation2 + $0x50] sm:$0xff] %vm786_vm1, %v2503_v33  ;;  %s2150_s16 = scalar_lea.hbm %s4141_s13, %s2333_s23 }
  0x20   : > { %v455_v2 = vld [vmem:[%s2633_s15 + $0x80] sm:$0xff]  ;;  %2223 = vmatmul.msk.f32.vlgmr.msra.gmra.mxu0 %vm472_vm0, %v2636_v1  ;;  %v456_v5 = vld [vmem:[%s2633_s15 + $0x88] sm:$0xff]  ;;  %v457_v8 = vld [vmem:[%s2633_s15 + $0x90] sm:$0xff]  ;;  %800 = vst.msk [vmem:[#allocation2 + $0x60] sm:$0xff] %vm786_vm1, %v2503_v33 }
  0x21   : > { %v463_v3 = vld [vmem:[%s2633_s15 + $0xc0] sm:$0xff]  ;;  %2239 = vmatmul.msk.f32.vlgmr.msra.gmra.mxu2 %vm472_vm0, %v455_v2  ;;  %v464_v6 = vld [vmem:[%s2633_s15 + $0xc8] sm:$0xff]  ;;  %v465_v9 = vld [vmem:[%s2633_s15 + $0xd0] sm:$0xff]  ;;  %801 = vst.msk [vmem:[#allocation2 + $0x68] sm:$0xff] %vm786_vm1, %v2503_v33 }
  0x22   : > { %2247 = vmatmul.msk.f32.vlgmr.msra.gmra.mxu3 %vm472_vm0, %v463_v3  ;;  %v2663_v10 = vld [vmem:[%s2633_s15 + $0x18] sm:$0xff]  ;;  %v2672_v13 = vld [vmem:[%s2633_s15 + $0x20] sm:$0xff]  ;;  %v2681_v16 = vld [vmem:[%s2633_s15 + $0x28] sm:$0xff]  ;;  %803 = vst.msk [vmem:[#allocation2 + $0x78] sm:$0xff] %vm786_vm1, %v2503_v33 }
  0x23   : > { %v458_v11 = vld [vmem:[%s2633_s15 + $0x98] sm:$0xff]  ;;  %v459_v14 = vld [vmem:[%s2633_s15 + $0xa0] sm:$0xff]  ;;  %v460_v17 = vld [vmem:[%s2633_s15 + $0xa8] sm:$0xff]  ;;  %804 = vst.msk [vmem:[#allocation2 + $0x80] sm:$0xff] %vm786_vm1, %v2503_v33 }
  0x24   : > { %v466_v12 = vld [vmem:[%s2633_s15 + $0xd8] sm:$0xff]  ;;  %v467_v15 = vld [vmem:[%s2633_s15 + $0xe0] sm:$0xff]  ;;  %v468_v18 = vld [vmem:[%s2633_s15 + $0xe8] sm:$0xff]  ;;  %806 = vst.msk [vmem:[#allocation2 + $0x90] sm:$0xff] %vm786_vm1, %v2503_v33 }
  0x25   : > { %v445_v19 = vld [vmem:[%s2633_s15 + $0x30] sm:$0xff]  ;;  %v446_v22 = vld [vmem:[%s2633_s15 + $0x38] sm:$0xff]  ;;  %v447_v25 = vld [vmem:[%s2633_s15 + $0x40] sm:$0xff]  ;;  %807 = vst.msk [vmem:[#allocation2 + $0x98] sm:$0xff] %vm786_vm1, %v2503_v33 }
  0x26   : > { %v461_v20 = vld [vmem:[%s2633_s15 + $0xb0] sm:$0xff]  ;;  %v462_v23 = vld [vmem:[%s2633_s15 + $0xb8] sm:$0xff]  ;;  %v448_v26 = vld [vmem:[%s2633_s15 + $0x48] sm:$0xff]  ;;  %809 = vst.msk [vmem:[#allocation2 + $0xa8] sm:$0xff] %vm786_vm1, %v2503_v33 }
  0x27   : > { %v469_v21 = vld [vmem:[%s2633_s15 + $0xf0] sm:$0xff]  ;;  %v470_v24 = vld [vmem:[%s2633_s15 + $0xf8] sm:$0xff]  ;;  %v452_v31 = vld [vmem:[%s2633_s15 + $0x68] sm:$0xff]  ;;  %810 = vst.msk [vmem:[#allocation2 + $0xb0] sm:$0xff] %vm786_vm1, %v2503_v33 }
  0x28   : > { %2224 = vmatmul.msk.f32.gmra.mxu0 %vm472_vm0, %v2645_v4  ;;  %v449_v27 = vld [vmem:[%s2633_s15 + $0x50] sm:$0xff]  ;;  %v454_v28 = vld [vmem:[%s2633_s15 + $0x78] sm:$0xff]  ;;  %v451_v32 = vld [vmem:[%s2633_s15 + $0x60] sm:$0xff]  ;;  %812 = vst.msk [vmem:[#allocation2 + $0xc0] sm:$0xff] %vm786_vm1, %v2503_v33 }
  0x29   : > { %2240 = vmatmul.msk.f32.gmra.mxu2 %vm472_vm0, %v456_v5  ;;  %2291 = vmatpush.xpose.msk.msrb.mxu3 %vm472_vm0, %v454_v28  ;;  %v453_v29 = vld [vmem:[%s2633_s15 + $0x70] sm:$0xff]  ;;  %v450_v30 = vld [vmem:[%s2633_s15 + $0x58] sm:$0xff]  ;;  %813 = vst.msk [vmem:[#allocation2 + $0xc8] sm:$0xff] %vm786_vm1, %v2503_v33  ;;  %v2782_v34 = vld [vmem:[%s4163_s2] ss:$0 sm:$0xff] }
  0x2a   : > { %2248 = vmatmul.msk.f32.gmra.mxu3 %vm472_vm0, %v464_v6  ;;  %815 = vst.msk [vmem:[#allocation2 + $0xd8] sm:$0xff] %vm786_vm1, %v2503_v33 }
  0x2b   : > { %816 = vst.msk [vmem:[#allocation2 + $0xe0] sm:$0xff] %vm786_vm1, %v2503_v33 }
  0x2c   : > { %818 = vst.msk [vmem:[#allocation2 + $0xf0] sm:$0xff] %vm786_vm1, %v2503_v33 }
  0x2d   : > { %2292 = vmatpush.xpose.msk.msrb.mxu3 %vm472_vm0, %v453_v29  ;;  %819 = vst.msk [vmem:[#allocation2 + $0xf8] sm:$0xff] %vm786_vm1, %v2503_v33 }
  0x2e   : > { %821 = vst.msk [vmem:[#allocation2 + $0x108] sm:$0xff] %vm786_vm1, %v2503_v33 }
  0x2f   : > { %822 = vst.msk [vmem:[#allocation2 + $0x110] sm:$0xff] %vm786_vm1, %v2503_v33 }
  0x30   : > { %2225 = vmatmul.msk.f32.gmra.mxu0 %vm472_vm0, %v2654_v7  ;;  %824 = vst.msk [vmem:[#allocation2 + $0x120] sm:$0xff] %vm786_vm1, %v2503_v33 }
  0x31   : > { %2241 = vmatmul.msk.f32.gmra.mxu2 %vm472_vm0, %v457_v8  ;;  %2293 = vmatpush.xpose.msk.msrb.mxu3 %vm472_vm0, %v452_v31  ;;  %825 = vst.msk [vmem:[#allocation2 + $0x128] sm:$0xff] %vm786_vm1, %v2503_v33 }
  0x32   : > { %2249 = vmatmul.msk.f32.gmra.mxu3 %vm472_vm0, %v465_v9  ;;  %827 = vst.msk [vmem:[#allocation2 + $0x138] sm:$0xff] %vm786_vm1, %v2503_v33 }
  0x33   : > { %828 = vst.msk [vmem:[#allocation2 + $0x140] sm:$0xff] %vm786_vm1, %v2503_v33 }
  0x34   : > { %830 = vst.msk [vmem:[#allocation2 + $0x150] sm:$0xff] %vm786_vm1, %v2503_v33 }
  0x35   : > { %2294 = vmatpush.xpose.msk.msrb.mxu3 %vm472_vm0, %v451_v32  ;;  %831 = vst.msk [vmem:[#allocation2 + $0x158] sm:$0xff] %vm786_vm1, %v2503_v33 }
  0x36   : > { %833 = vst.msk [vmem:[#allocation2 + $0x168] sm:$0xff] %vm786_vm1, %v2503_v33 }
  0x37   : > { %834 = vst.msk [vmem:[#allocation2 + $0x170] sm:$0xff] %vm786_vm1, %v2503_v33 }
  0x38   : > { %2226 = vmatmul.msk.f32.gmra.mxu0 %vm472_vm0, %v2663_v10  ;;  %836 = vst.msk [vmem:[#allocation2 + $0x180] sm:$0xff] %vm786_vm1, %v2503_v33 }
  0x39   : > { %2242 = vmatmul.msk.f32.gmra.mxu2 %vm472_vm0, %v458_v11  ;;  %2295 = vmatpush.xpose.msk.msrb.mxu3 %vm472_vm0, %v450_v30  ;;  %837 = vst.msk [vmem:[#allocation2 + $0x188] sm:$0xff] %vm786_vm1, %v2503_v33 }
  0x3a   : > { %2250 = vmatmul.msk.f32.gmra.mxu3 %vm472_vm0, %v466_v12  ;;  %839 = vst.msk [vmem:[#allocation2 + $0x198] sm:$0xff] %vm786_vm1, %v2503_v33 }
  0x3b   : > { %840 = vst.msk [vmem:[#allocation2 + $0x1a0] sm:$0xff] %vm786_vm1, %v2503_v33 }
  0x3c   : > { %793 = vst.msk [vmem:[#allocation2 + $0x28] sm:$0x3] %vm789_vm2, %v2503_v33 }
  0x3d   : > { %2296 = vmatpush.xpose.msk.msrb.mxu3 %vm472_vm0, %v449_v27  ;;  %790 = vst.msk [vmem:[#allocation2 + $0x10] sm:$0x3] %vm789_vm2, %v2503_v33 }
  0x3e   : > { %796 = vst.msk [vmem:[#allocation2 + $0x40] sm:$0x3] %vm789_vm2, %v2503_v33 }
  0x3f   : > { %799 = vst.msk [vmem:[#allocation2 + $0x58] sm:$0x3] %vm789_vm2, %v2503_v33 }
  0x40   : > { %2227 = vmatmul.msk.f32.gmra.mxu0 %vm472_vm0, %v2672_v13  ;;  %802 = vst.msk [vmem:[#allocation2 + $0x70] sm:$0x3] %vm789_vm2, %v2503_v33 }
  0x41   : > { %2243 = vmatmul.msk.f32.gmra.mxu2 %vm472_vm0, %v459_v14  ;;  %2297 = vmatpush.xpose.msk.msrb.mxu3 %vm472_vm0, %v448_v26  ;;  %805 = vst.msk [vmem:[#allocation2 + $0x88] sm:$0x3] %vm789_vm2, %v2503_v33 }
  0x42   : > { %2251 = vmatmul.msk.f32.gmra.mxu3 %vm472_vm0, %v467_v15  ;;  %808 = vst.msk [vmem:[#allocation2 + $0xa0] sm:$0x3] %vm789_vm2, %v2503_v33 }
  0x43   : > { %811 = vst.msk [vmem:[#allocation2 + $0xb8] sm:$0x3] %vm789_vm2, %v2503_v33 }
  0x44   : > { %814 = vst.msk [vmem:[#allocation2 + $0xd0] sm:$0x3] %vm789_vm2, %v2503_v33 }
  0x45   : > { %2298 = vmatpush.xpose.msk.msrb.mxu3 %vm472_vm0, %v447_v25  ;;  %817 = vst.msk [vmem:[#allocation2 + $0xe8] sm:$0x3] %vm789_vm2, %v2503_v33 }
  0x46   : > { %820 = vst.msk [vmem:[#allocation2 + $0x100] sm:$0x3] %vm789_vm2, %v2503_v33 }
  0x47   : > { %823 = vst.msk [vmem:[#allocation2 + $0x118] sm:$0x3] %vm789_vm2, %v2503_v33 }
  0x48   : > { %2228 = vmatmul.msk.f32.gmra.mxu0 %vm472_vm0, %v2681_v16  ;;  %826 = vst.msk [vmem:[#allocation2 + $0x130] sm:$0x3] %vm789_vm2, %v2503_v33 }
  0x49   : > { %2244 = vmatmul.msk.f32.gmra.mxu2 %vm472_vm0, %v460_v17  ;;  %2299 = vmatpush.xpose.msk.msrb.mxu3 %vm472_vm0, %v446_v22  ;;  %829 = vst.msk [vmem:[#allocation2 + $0x148] sm:$0x3] %vm789_vm2, %v2503_v33 }
  0x4a   : > { %2252 = vmatmul.msk.f32.gmra.mxu3 %vm472_vm0, %v468_v18  ;;  %832 = vst.msk [vmem:[#allocation2 + $0x160] sm:$0x3] %vm789_vm2, %v2503_v33 }
  0x4b   : > { %835 = vst.msk [vmem:[#allocation2 + $0x178] sm:$0x3] %vm789_vm2, %v2503_v33 }
  0x4c   : > { %838 = vst.msk [vmem:[#allocation2 + $0x190] sm:$0x3] %vm789_vm2, %v2503_v33 }
  0x4d   : > { %2300 = vmatpush.xpose.msk.msrb.mxu3 %vm472_vm0, %v445_v19  ;;  %841 = vst.msk [vmem:[#allocation2 + $0x1a8] sm:$0x3] %vm789_vm2, %v2503_v33 }
  0x50   : > { %2229 = vmatmul.msk.f32.gmra.mxu0 %vm472_vm0, %v445_v19 }
  0x51   : > { %2245 = vmatmul.msk.f32.gmra.mxu2 %vm472_vm0, %v461_v20  ;;  %2301 = vmatpush.xpose.msk.msrb.mxu3 %vm472_vm0, %v2681_v16 }
  0x52   : > { %2253 = vmatmul.msk.f32.gmra.mxu3 %vm472_vm0, %v469_v21 }
  0x55   : > { %2302 = vmatpush.xpose.msk.msrb.mxu3 %vm472_vm0, %v2672_v13 }
  0x58   : > { %2230 = vmatmul.msk.f32.gmra.mxu0 %vm472_vm0, %v446_v22 }
  0x59   : > { %2246 = vmatmul.msk.f32.gmra.mxu2 %vm472_vm0, %v462_v23  ;;  %2303 = vmatpush.xpose.msk.msrb.mxu3 %vm472_vm0, %v2663_v10 }
  0x5a   : > { %2254 = vmatmul.msk.f32.gmra.mxu3 %vm472_vm0, %v470_v24 }
  0x5d   : > { %2304 = vmatpush.xpose.msk.msrb.mxu3 %vm472_vm0, %v2654_v7 }
  0x60   : > { %2231 = vmatmul.msk.f32.gmra.mxu0 %vm472_vm0, %v447_v25 }
  0x61   : > { %2305 = vmatpush.xpose.msk.msrb.mxu3 %vm472_vm0, %v2645_v4 }
  0x65   : > { %2306 = vmatpush.xpose.msk.msrb.mxu3 %vm472_vm0, %v2636_v1 }
  0x68   : > { %2232 = vmatmul.msk.f32.gmra.mxu0 %vm472_vm0, %v448_v26 }
  0x70   : > { %2233 = vmatmul.msk.f32.gmra.mxu0 %vm472_vm0, %v449_v27 }
  0x78   : > { %2234 = vmatmul.msk.f32.gmra.mxu0 %vm472_vm0, %v450_v30 }
  0x80   : > { %2235 = vmatmul.msk.f32.gmra.mxu0 %vm472_vm0, %v451_v32 }
  0x88   : > { %2236 = vmatmul.msk.f32.gmra.mxu0 %vm472_vm0, %v452_v31 }
  0x90   : > { %2237 = vmatmul.msk.f32.gmra.mxu0 %vm472_vm0, %v453_v29 }
  0x98   : > { %2238 = vmatmul.msk.f32.gmra.mxu0 %vm472_vm0, %v454_v28 }
  0x9d   : > { %v586_v36 = vpop.f32.mrf.mxu0 }
  0x9e   : > { %v686_v37 = vmul.f32 %v2782_v34, %v586_v36 }
  0xa0   : > { %v722_v38 = vadd.f32 %v2791_v35, %v686_v37 }
  0xa2   : > { %v754_v39 = vmax.f32 %v722_v38, 0.0 }
  0xa4   : > { %v634_v40 = vpop.f32.mrf.mxu2  ;;  %843 = vst.msk [vmem:[#allocation2 + $0x19] sm:$0xff] %vm786_vm1, %v754_v39  ;;  %v2907_v39 = vld [vmem:[%s4132_s4] ss:$0 sm:$0xff] }
  0xa5   : > { %v702_v41 = vmul.f32 %v2782_v34, %v634_v40  ;;  %v658_v42 = vpop.f32.mrf.mxu3  ;;  %v589_v44 = vpop.f32.mrf.mxu0  ;;  %v2912_v40 = vld [vmem:[%s4132_s4 + $0x1] ss:$0 sm:$0xff] }
  0xa6   : > { %v710_v43 = vmul.f32 %v2782_v34, %v658_v42  ;;  %v687_v46 = vmul.f32 %v2782_v34, %v589_v44 }
  0xa7   : > { %v738_v45 = vadd.f32 %v2791_v35, %v702_v41 }
  0xa8   : > { %v746_v47 = vadd.f32 %v2791_v35, %v710_v43  ;;  %v723_v49 = vadd.f32 %v2791_v35, %v687_v46 }
  0xa9   : > { %v770_v48 = vmax.f32 %v738_v45, 0.0 }
  0xaa   : > { %v778_v50 = vmax.f32 %v746_v47, 0.0  ;;  %v755_v51 = vmax.f32 %v723_v49, 0.0  ;;  %v2924_v47 = vld [vmem:[%s4132_s4 + $0x2] ss:$0 sm:$0xff] }
  0xab   : > { %859 = vst.msk [vmem:[#allocation2 + $0xd9] sm:$0xff] %vm786_vm1, %v770_v48 }
  0xac   : > { %867 = vst.msk [vmem:[#allocation2 + $0x139] sm:$0xff] %vm786_vm1, %v778_v50  ;;  %v637_v52 = vpop.f32.mrf.mxu2 }
  0xad   : > { %844 = vst.msk [vmem:[#allocation2 + $0x21] sm:$0xff] %vm786_vm1, %v755_v51  ;;  %v661_v53 = vpop.f32.mrf.mxu3  ;;  %v592_v54 = vpop.f32.mrf.mxu0  ;;  %v703_v55 = vmul.f32 %v2782_v34, %v637_v52 }
  0xae   : > { %v711_v56 = vmul.f32 %v2782_v34, %v661_v53  ;;  %v688_v57 = vmul.f32 %v2782_v34, %v592_v54 }
  0xaf   : > { %v739_v58 = vadd.f32 %v2791_v35, %v703_v55 }
  0xb0   : > { %v747_v60 = vadd.f32 %v2791_v35, %v711_v56  ;;  %v724_v63 = vadd.f32 %v2791_v35, %v688_v57  ;;  %v2942_v56 = vld [vmem:[%s4132_s4 + $0x3] ss:$0 sm:$0xff] }
  0xb1   : > { %v771_v4 = vmax.f32 %v739_v58, 0.0 }
  0xb2   : > { %v779_v6 = vmax.f32 %v747_v60, 0.0  ;;  %v756_v8 = vmax.f32 %v724_v63, 0.0 }
  0xb3   : > { %860 = vst.msk [vmem:[#allocation2 + $0xe1] sm:$0xff] %vm786_vm1, %v771_v4  ;;  %v2916_v43 = vld [vmem:[#allocation2 + $0x138] sm:$0xff] }
  0xb4   : > { %v640_v59 = vpop.f32.mrf.mxu2  ;;  %868 = vst.msk [vmem:[#allocation2 + $0x141] sm:$0xff] %vm786_vm1, %v779_v6  ;;  %v2918_v44 = vld [vmem:[#allocation2 + $0x139] sm:$0xff]  ;;  %v935_v48 = vmul.f32 %v2907_v39, %v2916_v43 }
  0xb5   : > { %v704_v61 = vmul.f32 %v2782_v34, %v640_v59  ;;  %v664_v62 = vpop.f32.mrf.mxu3  ;;  %v595_v1 = vpop.f32.mrf.mxu0  ;;  %845 = vst.msk [vmem:[#allocation2 + $0x31] sm:$0xff] %vm786_vm1, %v756_v8  ;;  %v1033_v49 = vmul.f32 %v2912_v40, %v2918_v44 }
  0xb6   : > { %v712_v0 = vmul.f32 %v2782_v34, %v664_v62  ;;  %v689_v3 = vmul.f32 %v2782_v34, %v595_v1  ;;  %4164 = vst [vmem:[#allocation6_spill] sm:$0xff] %v2916_v43 }
  0xb7   : > { %v740_v2 = vadd.f32 %v2791_v35, %v704_v61  ;;  %4165 = vst [vmem:[#allocation7_spill] sm:$0xff] %v2918_v44  ;;  %v1065_v59 = vadd.f32 %v1033_v49, %v935_v48 }
  0xb8   : > { %v748_v5 = vadd.f32 %v2791_v35, %v712_v0  ;;  %v725_v7 = vadd.f32 %v2791_v35, %v689_v3 }
  0xb9   : > { %v772_v9 = vmax.f32 %v740_v2, 0.0  ;;  %v2958_v2 = vld [vmem:[%s4132_s4 + $0x4] ss:$0 sm:$0xff] }
  0xba   : > { %v780_v10 = vmax.f32 %v748_v5, 0.0  ;;  %v757_v12 = vmax.f32 %v725_v7, 0.0 }
  0xbb   : > { %861 = vst.msk [vmem:[#allocation2 + $0xf1] sm:$0xff] %vm786_vm1, %v772_v9  ;;  %v2932_v52 = vld [vmem:[#allocation2 + $0x140] sm:$0xff] }
  0xbc   : > { %v643_v11 = vpop.f32.mrf.mxu2  ;;  %869 = vst.msk [vmem:[#allocation2 + $0x151] sm:$0xff] %vm786_vm1, %v780_v10  ;;  %v2934_v53 = vld [vmem:[#allocation2 + $0x141] sm:$0xff]  ;;  %v936_v57 = vmul.f32 %v2907_v39, %v2932_v52 }
  0xbd   : > { %v705_v13 = vmul.f32 %v2782_v34, %v643_v11  ;;  %v667_v14 = vpop.f32.mrf.mxu3  ;;  %v598_v16 = vpop.f32.mrf.mxu0  ;;  %846 = vst.msk [vmem:[#allocation2 + $0x39] sm:$0xff] %vm786_vm1, %v757_v12  ;;  %v2936_v54 = vld [vmem:[#allocation2 + $0x13a] sm:$0xff]  ;;  %v1034_v58 = vmul.f32 %v2912_v40, %v2934_v53  ;;  %v2951_v63 = vld [vmem:[#allocation2 + $0x142] sm:$0xff] }
  0xbe   : > { %v713_v15 = vmul.f32 %v2782_v34, %v667_v14  ;;  %v690_v18 = vmul.f32 %v2782_v34, %v598_v16  ;;  %4166 = vst [vmem:[#allocation8_spill] sm:$0xff] %v2932_v52  ;;  %v1131_v0 = vmul.f32 %v2924_v47, %v2936_v54  ;;  %v1132_v4 = vmul.f32 %v2924_v47, %v2951_v63 }
  0xbf   : > { %v741_v17 = vadd.f32 %v2791_v35, %v705_v13  ;;  %4167 = vst [vmem:[#allocation9_spill] sm:$0xff] %v2934_v53  ;;  %v1066_v3 = vadd.f32 %v1034_v58, %v936_v57  ;;  %v3027_v58 = vmul.f32 %v2958_v2, %v2918_v44 }
  0xc0   : > { %v749_v19 = vadd.f32 %v2791_v35, %v713_v15  ;;  %v726_v21 = vadd.f32 %v2791_v35, %v690_v18  ;;  %4168 = vst [vmem:[#allocation10_spill] sm:$0xff] %v2936_v54  ;;  %v1163_v10 = vadd.f32 %v1131_v0, %v1065_v59  ;;  %v2978_v15 = vmul.f32 %v2942_v56, %v2932_v52  ;;  %v2985_v18 = vld [vmem:[%s4132_s4 + $0x5] ss:$0 sm:$0xff] }
  0xc1   : > { %v773_v20 = vmax.f32 %v741_v17, 0.0  ;;  %v1164_v13 = vadd.f32 %v1132_v4, %v1066_v3  ;;  %v3036_v4 = vmul.f32 %v2985_v18, %v2936_v54 }
  0xc2   : > { %v781_v22 = vmax.f32 %v749_v19, 0.0  ;;  %v758_v23 = vmax.f32 %v726_v21, 0.0 }
  0xc3   : > { %862 = vst.msk [vmem:[#allocation2 + $0xf9] sm:$0xff] %vm786_vm1, %v773_v20  ;;  %v2949_v62 = vld [vmem:[#allocation2 + $0x150] sm:$0xff] }
  0xc4   : > { %870 = vst.msk [vmem:[#allocation2 + $0x159] sm:$0xff] %vm786_vm1, %v781_v22  ;;  %v646_v24 = vpop.f32.mrf.mxu2  ;;  %v1229_v5 = vmul.f32 %v2942_v56, %v2949_v62  ;;  %v2972_v12 = vld [vmem:[#allocation2 + $0x151] sm:$0xff] }
  0xc5   : > { %847 = vst.msk [vmem:[#allocation2 + $0x49] sm:$0xff] %vm786_vm1, %v758_v23  ;;  %v706_v25 = vmul.f32 %v2782_v34, %v646_v24  ;;  %v670_v26 = vpop.f32.mrf.mxu3  ;;  %v601_v28 = vpop.f32.mrf.mxu0  ;;  %v1327_v23 = vmul.f32 %v2958_v2, %v2972_v12 }
  0xc6   : > { %v714_v27 = vmul.f32 %v2782_v34, %v670_v26  ;;  %v691_v30 = vmul.f32 %v2782_v34, %v601_v28  ;;  %v1261_v22 = vadd.f32 %v1229_v5, %v1163_v10 }
  0xc7   : > { %v742_v29 = vadd.f32 %v2791_v35, %v706_v25 }
  0xc8   : > { %v750_v31 = vadd.f32 %v2791_v35, %v714_v27  ;;  %v727_v33 = vadd.f32 %v2791_v35, %v691_v30 }
  0xc9   : > { %v774_v32 = vmax.f32 %v742_v29, 0.0 }
  0xca   : > { %v782_v36 = vmax.f32 %v750_v31, 0.0  ;;  %v759_v37 = vmax.f32 %v727_v33, 0.0 }
  0xcb   : > { %863 = vst.msk [vmem:[#allocation2 + $0x109] sm:$0xff] %vm786_vm1, %v774_v32  ;;  %v2969_v9 = vld [vmem:[#allocation2 + $0x158] sm:$0xff]  ;;  %v1359_v32 = vadd.f32 %v1327_v23, %v1261_v22  ;;  %v3051_v22 = vld [vmem:[%s4132_s4 + $0x7] ss:$0 sm:$0xff] }
  0xcc   : > { %871 = vst.msk [vmem:[#allocation2 + $0x169] sm:$0xff] %vm786_vm1, %v782_v36  ;;  %v649_v38 = vpop.f32.mrf.mxu2  ;;  %v1230_v14 = vmul.f32 %v2942_v56, %v2969_v9  ;;  %v2989_v20 = vld [vmem:[#allocation2 + $0x159] sm:$0xff]  ;;  %v1691_v23 = vld [vmem:[#allocation2 + $0x1a2] sm:$0xff] }
  0xcd   : > { %848 = vst.msk [vmem:[#allocation2 + $0x51] sm:$0xff] %vm786_vm1, %v759_v37  ;;  %v707_v41 = vmul.f32 %v2782_v34, %v649_v38  ;;  %v673_v42 = vpop.f32.mrf.mxu3  ;;  %v604_v46 = vpop.f32.mrf.mxu0  ;;  %v2991_v21 = vld [vmem:[#allocation2 + $0x152] sm:$0xff]  ;;  %v1328_v28 = vmul.f32 %v2958_v2, %v2989_v20  ;;  %v3002_v31 = vld [vmem:[#allocation2 + $0x15a] sm:$0xff]  ;;  %v938_v37 = vmul.f32 %v2907_v39, %v2969_v9  ;;  %v1036_v38 = vmul.f32 %v2912_v40, %v2989_v20 }
  0xce   : > { %v715_v45 = vmul.f32 %v2782_v34, %v673_v42  ;;  %v692_v51 = vmul.f32 %v2782_v34, %v604_v46  ;;  %v1262_v27 = vadd.f32 %v1230_v14, %v1164_v13  ;;  %v1425_v33 = vmul.f32 %v2985_v18, %v2991_v21  ;;  %v1495_v46 = vld [vmem:[#allocation2 + $0x1a0] sm:$0xff] }
  0xcf   : > { %v743_v50 = vadd.f32 %v2791_v35, %v707_v41  ;;  %v3013_v41 = vmul.f32 %v2942_v56, %v2916_v43  ;;  %v1426_v49 = vmul.f32 %v2985_v18, %v3002_v31  ;;  %v1134_v57 = vmul.f32 %v2924_v47, %v3002_v31  ;;  %v1593_v13 = vld [vmem:[#allocation2 + $0x1a1] sm:$0xff] }
  0xd0   : > { %v751_v55 = vadd.f32 %v2791_v35, %v715_v45  ;;  %v728_v61 = vadd.f32 %v2791_v35, %v692_v51  ;;  %v1360_v48 = vadd.f32 %v1328_v28, %v1262_v27  ;;  %v3021_v51 = vld [vmem:[%s4132_s4 + $0x6] ss:$0 sm:$0xff]  ;;  %v3032_v3 = vadd.f32 %v1425_v33, %v1359_v32  ;;  %v3062_v32 = vld [vmem:[%s4132_s4 + $0x8] ss:$0 sm:$0xff] }
  0xd1   : > { %v775_v60 = vmax.f32 %v743_v50, 0.0 }
  0xd2   : > { %v783_v1 = vmax.f32 %v751_v55, 0.0  ;;  %v760_v6 = vmax.f32 %v728_v61, 0.0  ;;  %v1068_v55 = vadd.f32 %v1036_v38, %v938_v37 }
  0xd3   : > { %864 = vst.msk [vmem:[#allocation2 + $0x111] sm:$0xff] %vm786_vm1, %v775_v60  ;;  %v2965_v7 = vld [vmem:[#allocation2 + $0x168] sm:$0xff] }
  0xd4   : > { %v2967_v8 = vld [vmem:[#allocation2 + $0x169] sm:$0xff]  ;;  %872 = vst.msk [vmem:[#allocation2 + $0x171] sm:$0xff] %vm786_vm1, %v783_v1  ;;  %v652_v11 = vpop.f32.mrf.mxu2  ;;  %v939_v19 = vmul.f32 %v2907_v39, %v2965_v7 }
  0xd5   : > { %849 = vst.msk [vmem:[#allocation2 + $0x61] sm:$0xff] %vm786_vm1, %v760_v6  ;;  %v708_v16 = vmul.f32 %v2782_v34, %v652_v11  ;;  %v676_v17 = vpop.f32.mrf.mxu3  ;;  %v607_v25 = vpop.f32.mrf.mxu0  ;;  %v1037_v26 = vmul.f32 %v2912_v40, %v2967_v8  ;;  %v3042_v11 = vmul.f32 %v3021_v51, %v1495_v46 }
  0xd6   : > { %v716_v24 = vmul.f32 %v2782_v34, %v676_v17  ;;  %v693_v30 = vmul.f32 %v2782_v34, %v607_v25  ;;  %v1458_v25 = vadd.f32 %v1426_v49, %v1360_v48  ;;  %v3075_v48 = vmul.f32 %v3062_v32, %v1691_v23  ;;  %v1592_v49 = vld [vmem:[#allocation2 + $0x199] sm:$0xff] }
  0xd7   : > { %v744_v29 = vadd.f32 %v2791_v35, %v708_v16  ;;  %v1069_v1 = vadd.f32 %v1037_v26, %v939_v19  ;;  %v1166_v16 = vadd.f32 %v1134_v57, %v1068_v55  ;;  %v1524_v26 = vmul.f32 %v3021_v51, %v2965_v7 }
  0xd8   : > { %v752_v36 = vadd.f32 %v2791_v35, %v716_v24  ;;  %v729_v45 = vadd.f32 %v2791_v35, %v693_v30  ;;  %v1035_v23 = vmul.f32 %v2912_v40, %v2972_v12 }
  0xd9   : > { %v776_v42 = vmax.f32 %v744_v29, 0.0 }
  0xda   : > { %v784_v50 = vmax.f32 %v752_v36, 0.0  ;;  %v761_v59 = vmax.f32 %v729_v45, 0.0  ;;  %v1494_v36 = vld [vmem:[#allocation2 + $0x198] sm:$0xff]  ;;  %v1622_v45 = vmul.f32 %v3051_v22, %v2967_v8 }
  0xdb   : > { %865 = vst.msk [vmem:[#allocation2 + $0x121] sm:$0xff] %vm786_vm1, %v776_v42  ;;  %v906_v60 = vld [vmem:[#allocation2 + $0x170] sm:$0xff]  ;;  %v3069_v42 = vmul.f32 %v3051_v22, %v1593_v13 }
  0xdc   : > { %v1004_v61 = vld [vmem:[#allocation2 + $0x171] sm:$0xff]  ;;  %873 = vst.msk [vmem:[#allocation2 + $0x181] sm:$0xff] %vm786_vm1, %v784_v50  ;;  %v655_v5 = vpop.f32.mrf.mxu2  ;;  %v940_v6 = vmul.f32 %v2907_v39, %v906_v60  ;;  %v1232_v24 = vmul.f32 %v2942_v56, %v906_v60 }
  0xdd   : > { %v3030_v0 = vld [vmem:[#allocation2 + $0x172] sm:$0xff]  ;;  %v1038_v10 = vmul.f32 %v2912_v40, %v1004_v61  ;;  %v3044_v14 = vld [vmem:[#allocation2 + $0x16a] sm:$0xff]  ;;  %850 = vst.msk [vmem:[#allocation2 + $0x69] sm:$0xff] %vm786_vm1, %v761_v59  ;;  %v709_v17 = vmul.f32 %v2782_v34, %v655_v5  ;;  %v679_v19 = vpop.f32.mrf.mxu3  ;;  %v610_v28 = vpop.f32.mrf.mxu0  ;;  %v1330_v55 = vmul.f32 %v2958_v2, %v1004_v61  ;;  %v3080_v5 = vmul.f32 %v3021_v51, %v1494_v36 }
  0xde   : > { %v717_v27 = vmul.f32 %v2782_v34, %v679_v19  ;;  %v1136_v30 = vmul.f32 %v2924_v47, %v3030_v0  ;;  %v1135_v33 = vmul.f32 %v2924_v47, %v3044_v14  ;;  %v694_v38 = vmul.f32 %v2782_v34, %v610_v28  ;;  %v1690_v19 = vld [vmem:[#allocation2 + $0x19a] sm:$0xff] }
  0xdf   : > { %v1070_v29 = vadd.f32 %v1038_v10, %v940_v6  ;;  %v745_v37 = vadd.f32 %v2791_v35, %v709_v17  ;;  %v1264_v50 = vadd.f32 %v1232_v24, %v1166_v16  ;;  %v937_v6 = vmul.f32 %v2907_v39, %v2949_v62 }
  0xe0   : > { %v753_v46 = vadd.f32 %v2791_v35, %v717_v27  ;;  %v730_v59 = vadd.f32 %v2791_v35, %v694_v38  ;;  %v1167_v17 = vadd.f32 %v1135_v33, %v1069_v1  ;;  %v3090_v28 = vmul.f32 %v3051_v22, %v1592_v49 }
  0xe1   : > { %v777_v57 = vmax.f32 %v745_v37, 0.0  ;;  %v3084_v13 = vadd.f32 %v1136_v30, %v1070_v29  ;;  %v1428_v36 = vmul.f32 %v2985_v18, %v3030_v0  ;;  %v1133_v29 = vmul.f32 %v2924_v47, %v2991_v21 }
  0xe2   : > { %v785_v10 = vmax.f32 %v753_v46, 0.0  ;;  %v762_v16 = vmax.f32 %v730_v59, 0.0  ;;  %v1362_v30 = vadd.f32 %v1330_v55, %v1264_v50  ;;  %v1067_v33 = vadd.f32 %v1035_v23, %v937_v6 }
  0xe3   : > { %866 = vst.msk [vmem:[#allocation2 + $0x129] sm:$0xff] %vm786_vm1, %v777_v57  ;;  %v1199_v24 = vld [vmem:[#allocation2 + $0x180] sm:$0xff]  ;;  %v1231_v37 = vmul.f32 %v2942_v56, %v2965_v7  ;;  %v3102_v38 = vmul.f32 %v3062_v32, %v1690_v19  ;;  %v1329_v46 = vmul.f32 %v2958_v2, %v2967_v8  ;;  %v1525_v49 = vmul.f32 %v3021_v51, %v906_v60 }
  0xe4   : > { %v1297_v27 = vld [vmem:[#allocation2 + $0x181] sm:$0xff]  ;;  %874 = vst.msk [vmem:[#allocation2 + $0x189] sm:$0xff] %vm786_vm1, %v785_v10  ;;  %v1233_v1 = vmul.f32 %v2942_v56, %v1199_v24  ;;  %v1623_v57 = vmul.f32 %v3051_v22, %v1004_v61  ;;  %v1165_v55 = vadd.f32 %v1133_v29, %v1067_v33  ;;  %v1556_v6 = vadd.f32 %v1524_v26, %v3032_v3 }
  0xe5   : > { %851 = vst.msk [vmem:[#allocation2 + $0x79] sm:$0xff] %vm786_vm1, %v762_v16  ;;  %v613_v59 = vpop.f32.mrf.mxu0  ;;  %v1331_v50 = vmul.f32 %v2958_v2, %v1297_v27  ;;  %v1557_v23 = vadd.f32 %v1525_v49, %v1458_v25  ;;  %v1721_v19 = vmul.f32 %v3062_v32, %v3030_v0  ;;  %v1720_v8 = vmul.f32 %v3062_v32, %v3044_v14 }
  0xe6   : > { %v1265_v10 = vadd.f32 %v1233_v1, %v1167_v17  ;;  %v695_v7 = vmul.f32 %v2782_v34, %v613_v59  ;;  %v1460_v16 = vadd.f32 %v1428_v36, %v1362_v30  ;;  %v1263_v60 = vadd.f32 %v1231_v37, %v1165_v55 }
  0xe7   : > { %v1427_v61 = vmul.f32 %v2985_v18, %v3044_v14  ;;  %v1654_v17 = vadd.f32 %v1622_v45, %v1556_v6  ;;  %v1526_v29 = vmul.f32 %v3021_v51, %v1199_v24  ;;  %v1655_v3 = vadd.f32 %v1623_v57, %v1557_v23 }
  0xe8   : > { %v731_v1 = vadd.f32 %v2791_v35, %v695_v7  ;;  %v3121_v25 = vmul.f32 %v2958_v2, %v2934_v53  ;;  %v1363_v26 = vadd.f32 %v1331_v50, %v1265_v10  ;;  %v1361_v0 = vadd.f32 %v1329_v46, %v1263_v60  ;;  %v3138_v50 = vld [vmem:[%s4133_s5] ss:$0 sm:$0xff] }
  0xe9   : > { %v1624_v33 = vmul.f32 %v3051_v22, %v1297_v27  ;;  %v1752_v49 = vadd.f32 %v1720_v8, %v1654_v17  ;;  %v1753_v55 = vadd.f32 %v1721_v19, %v1655_v3 }
  0xea   : > { %v3124_v36 = vld [vmem:[#allocation2 + $0x128] sm:$0xff]  ;;  %v763_v14 = vmax.f32 %v731_v1, 0.0  ;;  %v1459_v60 = vadd.f32 %v1427_v61, %v1361_v0  ;;  %v3155_v61 = vld [vmem:[%s4134_s6] ss:$0 sm:$0xff]  ;;  %v1424_v0 = vmul.f32 %v2985_v18, %v2951_v63 }
  0xeb   : > { %v3126_v30 = vld [vmem:[#allocation2 + $0x129] sm:$0xff]  ;;  %v934_v24 = vmul.f32 %v2907_v39, %v3124_v36  ;;  %v1789_v44 = vmul.f32 %v3138_v50, %v1753_v55 }
  0xec   : > { %v1200_v45 = vld [vmem:[#allocation2 + $0x188] sm:$0xff]  ;;  %v1032_v57 = vmul.f32 %v2912_v40, %v3126_v30  ;;  %852 = vst.msk [vmem:[#allocation2 + $0x81] sm:$0xff] %vm786_vm1, %v763_v14  ;;  %v1558_v53 = vadd.f32 %v1526_v29, %v1459_v60  ;;  %v1788_v14 = vmul.f32 %v3138_v50, %v1752_v49  ;;  %v1523_v49 = vmul.f32 %v3021_v51, %v2969_v9  ;;  %v3176_v9 = vld [vmem:[#allocation2 + $0x120] sm:$0xff] }
  0xed   : > { %v1298_v37 = vld [vmem:[#allocation2 + $0x189] sm:$0xff]  ;;  %v1234_v46 = vmul.f32 %v2942_v56, %v1200_v45  ;;  %v1527_v7 = vmul.f32 %v3021_v51, %v1200_v45  ;;  %v616_v17 = vpop.f32.mrf.mxu0 }
  0xee   : > { %v1396_v59 = vld [vmem:[#allocation2 + $0x18a] sm:$0xff]  ;;  %v1332_v27 = vmul.f32 %v2958_v2, %v1298_v37  ;;  %v1395_v6 = vld [vmem:[#allocation2 + $0x182] sm:$0xff]  ;;  %v1625_v19 = vmul.f32 %v3051_v22, %v1298_v37  ;;  %v696_v43 = vmul.f32 %v2782_v34, %v616_v17  ;;  %v1656_v29 = vadd.f32 %v1624_v33, %v1558_v53 }
  0xef   : > { %v1430_v10 = vmul.f32 %v2985_v18, %v1396_v59  ;;  %v1429_v23 = vmul.f32 %v2985_v18, %v1395_v6  ;;  %v1723_v8 = vmul.f32 %v3062_v32, %v1396_v59  ;;  %v1266_v1 = vadd.f32 %v1234_v46, %v3084_v13  ;;  %v3150_v52 = vld [vmem:[#allocation2 + $0x12a] sm:$0xff] }
  0xf0   : > { %v1559_v3 = vadd.f32 %v1527_v7, %v1460_v16  ;;  %v1722_v54 = vmul.f32 %v3062_v32, %v1395_v6  ;;  %v1064_v16 = vadd.f32 %v1032_v57, %v934_v24  ;;  %v732_v59 = vadd.f32 %v2791_v35, %v696_v43  ;;  %v3168_v24 = vld [vmem:[#allocation2 + $0x121] sm:$0xff] }
  0xf1   : > { %v1461_v45 = vadd.f32 %v1429_v23, %v1363_v26  ;;  %v1364_v37 = vadd.f32 %v1332_v27, %v1266_v1  ;;  %v3164_v27 = vadd.f32 %v3155_v61, %v1789_v44  ;;  %v1130_v6 = vmul.f32 %v2924_v47, %v3150_v52  ;;  %v3170_v57 = vld [vmem:[#allocation2 + $0x122] sm:$0xff] }
  0xf2   : > { %v1657_v13 = vadd.f32 %v1625_v19, %v1559_v3  ;;  %v764_v7 = vmax.f32 %v732_v59, 0.0  ;;  %v3174_v53 = vadd.f32 %v3155_v61, %v1788_v14  ;;  %v933_v23 = vmul.f32 %v2907_v39, %v3176_v9  ;;  %v3206_v59 = vld [vmem:[#allocation2 + $0x111] sm:$0xff] }
  0xf3   : > { %v1560_v26 = vadd.f32 %v3080_v5, %v1461_v45  ;;  %v1462_v55 = vadd.f32 %v1430_v10, %v1364_v37  ;;  %v1754_v5 = vadd.f32 %v1722_v54, %v1656_v29  ;;  %v1162_v10 = vadd.f32 %v1130_v6, %v1064_v16 }
  0xf4   : > { %v1755_v46 = vadd.f32 %v1723_v8, %v1657_v13  ;;  %853 = vst.msk [vmem:[#allocation2 + $0x91] sm:$0xff] %vm786_vm1, %v764_v7  ;;  %v1031_v54 = vmul.f32 %v2912_v40, %v3168_v24  ;;  %v1129_v8 = vmul.f32 %v2924_v47, %v3170_v57  ;;  %v1621_v1 = vmul.f32 %v3051_v22, %v2989_v20  ;;  %v3200_v13 = vld [vmem:[#allocation2 + $0x110] sm:$0xff] }
  0xf5   : > { %v1658_v43 = vadd.f32 %v3090_v28, %v1560_v26  ;;  %v1561_v33 = vadd.f32 %v3042_v11, %v1462_v55  ;;  %v1790_v28 = vmul.f32 %v3138_v50, %v1754_v5  ;;  %v619_v60 = vpop.f32.mrf.mxu0  ;;  %v1260_v17 = vadd.f32 %v2978_v15, %v1162_v10 }
  0xf6   : > { %v1791_v44 = vmul.f32 %v3138_v50, %v1755_v46  ;;  %v1719_v3 = vmul.f32 %v3062_v32, %v3002_v31  ;;  %v1063_v37 = vadd.f32 %v1031_v54, %v933_v23  ;;  %v1857_v15 = vmax.f32 %v3164_v27, 0.0  ;;  %v3214_v46 = vld [vmem:[#allocation2 + $0x112] sm:$0xff] }
  0xf7   : > { %v1756_v19 = vadd.f32 %v3102_v38, %v1658_v43  ;;  %v1659_v11 = vadd.f32 %v3069_v42, %v1561_v33  ;;  %v697_v38 = vmul.f32 %v2782_v34, %v619_v60  ;;  %v1856_v16 = vmax.f32 %v3174_v53, 0.0  ;;  %v3236_v60 = vld [vmem:[#allocation2 + $0x109] sm:$0xff] }
  0xf8   : > { %v3198_v14 = vadd.f32 %v3155_v61, %v1791_v44  ;;  %v1358_v20 = vadd.f32 %v3121_v25, %v1260_v17  ;;  %v3210_v26 = vadd.f32 %v3155_v61, %v1790_v28  ;;  %v1161_v29 = vadd.f32 %v1129_v8, %v1063_v37  ;;  %v3234_v8 = vld [vmem:[#allocation2 + $0x108] sm:$0xff] }
  0xf9   : > { %v1792_v45 = vmul.f32 %v3138_v50, %v1756_v19  ;;  %v1757_v42 = vadd.f32 %v3075_v48, %v1659_v11  ;;  %v733_v31 = vadd.f32 %v2791_v35, %v697_v38  ;;  %v1522_v55 = vmul.f32 %v3021_v51, %v2949_v62 }
  0xfa   : > { %v1456_v7 = vadd.f32 %v1424_v0, %v1358_v20  ;;  %v932_v25 = vmul.f32 %v2907_v39, %v3200_v13  ;;  %v1859_v5 = vmax.f32 %v3198_v14, 0.0  ;;  %v1259_v33 = vadd.f32 %v3013_v41, %v1161_v29  ;;  %v3302_v14 = vld [vmem:[#allocation2 + $0xf0] sm:$0xff] }
  0xfb   : > { %v1793_v48 = vmul.f32 %v3138_v50, %v1757_v42  ;;  %v1828_v6 = vadd.f32 %v3155_v61, %v1792_v45  ;;  %v765_v43 = vmax.f32 %v733_v31, 0.0  ;;  %v1030_v44 = vmul.f32 %v2912_v40, %v3206_v59 }
  0xfc   : > { %v1555_v10 = vadd.f32 %v1523_v49, %v1456_v7  ;;  %v1620_v23 = vmul.f32 %v3051_v22, %v2972_v12  ;;  %v1128_v0 = vmul.f32 %v2924_v47, %v3214_v46  ;;  %v1858_v19 = vmax.f32 %v3210_v26, 0.0  ;;  %v3238_v49 = vld [vmem:[#allocation2 + $0x10a] sm:$0xff] }
  0xfd   : > { %v1829_v62 = vadd.f32 %v3155_v61, %v1793_v48  ;;  %854 = vst.msk [vmem:[#allocation2 + $0x99] sm:$0xff] %vm786_vm1, %v765_v43  ;;  %v1357_v28 = vadd.f32 %v3027_v58, %v1259_v33  ;;  %v1062_v54 = vadd.f32 %v1030_v44, %v932_v25  ;;  %v1226_v41 = vmul.f32 %v2942_v56, %v3124_v36  ;;  %v622_v12 = vpop.f32.mrf.mxu0  ;;  %v4169_v43 = vld [vmem:[#allocation8_spill] sm:$0xff] }
  0xfe   : > { %v1860_v17 = vmax.f32 %v1828_v6, 0.0  ;;  %v1653_v38 = vadd.f32 %v1621_v1, %v1555_v10  ;;  %v1718_v45 = vmul.f32 %v3062_v32, %v2991_v21  ;;  %v698_v37 = vmul.f32 %v2782_v34, %v622_v12 }
  0xff   : > { %v1861_v11 = vmax.f32 %v1829_v62, 0.0  ;;  %v1455_v58 = vadd.f32 %v3036_v4, %v1357_v28  ;;  %v1160_v42 = vadd.f32 %v1128_v0, %v1062_v54  ;;  %v1324_v20 = vmul.f32 %v2958_v2, %v3126_v30  ;;  %v4170_v28 = vld [vmem:[#allocation9_spill] sm:$0xff] }
 0x100   : > { %v1751_v31 = vadd.f32 %v1719_v3, %v1653_v38  ;;  %v931_v29 = vmul.f32 %v2907_v39, %v3234_v8  ;;  %v1029_v1 = vmul.f32 %v2912_v40, %v3236_v60  ;;  %v1127_v21 = vmul.f32 %v2924_v47, %v3238_v49  ;;  %v3270_v38 = vld [vmem:[#allocation2 + $0xf8] sm:$0xff] }
 0x101   : > { %2273 = vmatpush.xpose.msk.msrb.mxu2 %vm786_vm1, %v1861_v11  ;;  %v734_v48 = vadd.f32 %v2791_v35, %v698_v37  ;;  %v1554_v6 = vadd.f32 %v1522_v55, %v1455_v58  ;;  %v1258_v4 = vadd.f32 %v1226_v41, %v1160_v42  ;;  %v1422_v7 = vmul.f32 %v2985_v18, %v3150_v52  ;;  %v3272_v37 = vld [vmem:[#allocation2 + $0xf9] sm:$0xff] }
 0x102   : > { %v1787_v25 = vmul.f32 %v3138_v50, %v1751_v31  ;;  %v1521_v3 = vmul.f32 %v3021_v51, %v4169_v43  ;;  %v1061_v33 = vadd.f32 %v1029_v1, %v931_v29  ;;  %v1225_v44 = vmul.f32 %v2942_v56, %v3176_v9  ;;  %v3279_v42 = vld [vmem:[#allocation2 + $0xfa] sm:$0xff] }
 0x103   : > { %v766_v62 = vmax.f32 %v734_v48, 0.0  ;;  %v1652_v10 = vadd.f32 %v1620_v23, %v1554_v6  ;;  %v1356_v0 = vadd.f32 %v1324_v20, %v1258_v4  ;;  %v1619_v54 = vmul.f32 %v3051_v22, %v4170_v28 }
 0x104   : > { %v1717_v55 = vmul.f32 %v3062_v32, %v2951_v63  ;;  %v1159_v41 = vadd.f32 %v1127_v21, %v1061_v33  ;;  %v1323_v12 = vmul.f32 %v2958_v2, %v3168_v24  ;;  %v1421_v11 = vmul.f32 %v2985_v18, %v3170_v57  ;;  %v4172_v33 = vld [vmem:[#allocation7_spill] sm:$0xff] }
 0x105   : > { %2274 = vmatpush.xpose.msk.msrb.mxu2 %vm786_vm1, %v1860_v17  ;;  %855 = vst.msk [vmem:[#allocation2 + $0xa9] sm:$0xff] %vm786_vm1, %v766_v62  ;;  %v1750_v23 = vadd.f32 %v1718_v45, %v1652_v10  ;;  %v1454_v58 = vadd.f32 %v1422_v7, %v1356_v0  ;;  %v930_v17 = vmul.f32 %v2907_v39, %v3270_v38  ;;  %v625_v20 = vpop.f32.mrf.mxu0  ;;  %v4173_v62 = vld [vmem:[#allocation10_spill] sm:$0xff] }
 0x106   : > { %v1028_v63 = vmul.f32 %v2912_v40, %v3272_v37  ;;  %v3282_v31 = vadd.f32 %v3155_v61, %v1787_v25  ;;  %v1257_v29 = vadd.f32 %v1225_v44, %v1159_v41  ;;  %v1126_v1 = vmul.f32 %v2924_v47, %v3279_v42  ;;  %v4171_v25 = vld [vmem:[#allocation6_spill] sm:$0xff] }
 0x107   : > { %v1224_v45 = vmul.f32 %v2942_v56, %v3200_v13  ;;  %v699_v21 = vmul.f32 %v2782_v34, %v625_v20  ;;  %v1786_v48 = vmul.f32 %v3138_v50, %v1750_v23  ;;  %v1553_v6 = vadd.f32 %v1521_v3, %v1454_v58 }
 0x108   : > { %v1060_v4 = vadd.f32 %v1028_v63, %v930_v17  ;;  %v1355_v7 = vadd.f32 %v1323_v12, %v1257_v29  ;;  %v1520_v43 = vmul.f32 %v3021_v51, %v4171_v25  ;;  %v1618_v44 = vmul.f32 %v3051_v22, %v4172_v33  ;;  %v3312_v29 = vld [vmem:[#allocation2 + $0xf1] sm:$0xff] }
 0x109   : > { %2275 = vmatpush.xpose.msk.msrb.mxu2 %vm786_vm1, %v1859_v5  ;;  %v1716_v10 = vmul.f32 %v3062_v32, %v4173_v62  ;;  %v735_v0 = vadd.f32 %v2791_v35, %v699_v21  ;;  %v1651_v28 = vadd.f32 %v1619_v54, %v1553_v6  ;;  %v1322_v3 = vmul.f32 %v2958_v2, %v3206_v59 }
 0x10a   : > { %v1158_v41 = vadd.f32 %v1126_v1, %v1060_v4  ;;  %v1855_v5 = vmax.f32 %v3282_v31, 0.0  ;;  %v3306_v12 = vadd.f32 %v3155_v61, %v1786_v48  ;;  %v1453_v23 = vadd.f32 %v1421_v11, %v1355_v7  ;;  %v3314_v1 = vld [vmem:[#allocation2 + $0xf2] sm:$0xff]  ;;  %v3331_v4 = vld [vmem:[#allocation2 + $0xe0] sm:$0xff] }
 0x10b   : > { %v929_v58 = vmul.f32 %v2907_v39, %v3302_v14  ;;  %v767_v17 = vmax.f32 %v735_v0, 0.0  ;;  %v1749_v63 = vadd.f32 %v1717_v55, %v1651_v28  ;;  %v1420_v54 = vmul.f32 %v2985_v18, %v3214_v46  ;;  %v3338_v0 = vld [vmem:[#allocation2 + $0xe2] sm:$0xff] }
 0x10c   : > { %v1256_v20 = vadd.f32 %v1224_v45, %v1158_v41  ;;  %v1552_v21 = vadd.f32 %v1520_v43, %v1453_v23  ;;  %v1519_v11 = vmul.f32 %v3021_v51, %v3124_v36  ;;  %v1027_v48 = vmul.f32 %v2912_v40, %v3312_v29  ;;  %v3333_v36 = vld [vmem:[#allocation2 + $0xe1] sm:$0xff] }
 0x10d   : > { %2276 = vmatpush.xpose.msk.msrb.mxu2 %vm786_vm1, %v1858_v19  ;;  %v1125_v55 = vmul.f32 %v2924_v47, %v3314_v1  ;;  %856 = vst.msk [vmem:[#allocation2 + $0xb1] sm:$0xff] %vm786_vm1, %v767_v17  ;;  %v1785_v45 = vmul.f32 %v3138_v50, %v1749_v63  ;;  %v1617_v26 = vmul.f32 %v3051_v22, %v3126_v30  ;;  %v628_v7 = vpop.f32.mrf.mxu0  ;;  %v1854_v25 = vmax.f32 %v3306_v12, 0.0 }
 0x10e   : > { %v1354_v6 = vadd.f32 %v1322_v3, %v1256_v20  ;;  %v1715_v19 = vmul.f32 %v3062_v32, %v3150_v52  ;;  %v1650_v43 = vadd.f32 %v1618_v44, %v1552_v21  ;;  %v1059_v33 = vadd.f32 %v1027_v48, %v929_v58  ;;  %v3361_v48 = vld [vmem:[#allocation2 + $0xd8] sm:$0xff] }
 0x10f   : > { %v1223_v62 = vmul.f32 %v2942_v56, %v3234_v8  ;;  %v700_v28 = vmul.f32 %v2782_v34, %v628_v7  ;;  %v1321_v52 = vmul.f32 %v2958_v2, %v3236_v60  ;;  %v1419_v41 = vmul.f32 %v2985_v18, %v3238_v49 }
 0x110   : > { %v1452_v30 = vadd.f32 %v1420_v54, %v1354_v6  ;;  %v1748_v44 = vadd.f32 %v1716_v10, %v1650_v43  ;;  %v1157_v3 = vadd.f32 %v1125_v55, %v1059_v33  ;;  %v928_v23 = vmul.f32 %v2907_v39, %v3331_v4 }
 0x111   : > { %2277 = vmatpush.xpose.msk.msrb.mxu2 %vm786_vm1, %v1857_v15  ;;  %v1026_v58 = vmul.f32 %v2912_v40, %v3333_v36  ;;  %v736_v17 = vadd.f32 %v2791_v35, %v700_v28  ;;  %v3354_v63 = vadd.f32 %v3155_v61, %v1785_v45  ;;  %v1124_v54 = vmul.f32 %v2924_v47, %v3338_v0  ;;  %v3367_v45 = vld [vmem:[#allocation2 + $0xd9] sm:$0xff] }
 0x112   : > { %v1551_v20 = vadd.f32 %v1519_v11, %v1452_v30  ;;  %v1784_v27 = vmul.f32 %v3138_v50, %v1748_v44  ;;  %v1255_v15 = vadd.f32 %v1223_v62, %v1157_v3  ;;  %v1222_v21 = vmul.f32 %v2942_v56, %v3270_v38  ;;  %v3376_v62 = vld [vmem:[#allocation2 + $0xda] sm:$0xff] }
 0x113   : > { %v1058_v10 = vadd.f32 %v1026_v58, %v928_v23  ;;  %v768_v55 = vmax.f32 %v736_v17, 0.0  ;;  %v1518_v35 = vmul.f32 %v3021_v51, %v3176_v9  ;;  %v1616_v11 = vmul.f32 %v3051_v22, %v3168_v24 }
 0x114   : > { %v1649_v6 = vadd.f32 %v1617_v26, %v1551_v20  ;;  %v1353_v7 = vadd.f32 %v1321_v52, %v1255_v15  ;;  %v1714_v43 = vmul.f32 %v3062_v32, %v3170_v57  ;;  %v1320_v26 = vmul.f32 %v2958_v2, %v3272_v37  ;;  %v3412_v15 = vld [vmem:[#allocation2 + $0xb1] sm:$0xff] }
 0x115   : > { %2278 = vmatpush.xpose.msk.msrb.mxu2 %vm786_vm1, %v1856_v16  ;;  %v1156_v33 = vadd.f32 %v1124_v54, %v1058_v10  ;;  %857 = vst.msk [vmem:[#allocation2 + $0xc1] sm:$0xff] %vm786_vm1, %v768_v55  ;;  %v1853_v24 = vmax.f32 %v3354_v63, 0.0  ;;  %v1418_v53 = vmul.f32 %v2985_v18, %v3279_v42  ;;  %v927_v16 = vmul.f32 %v2907_v39, %v3361_v48  ;;  %v631_v28 = vpop.f32.mrf.mxu0  ;;  %v3400_v54 = vld [vmem:[#allocation2 + $0xb0] sm:$0xff] }
 0x116   : > { %v1747_v9 = vadd.f32 %v1715_v19, %v1649_v6  ;;  %v3385_v57 = vadd.f32 %v3155_v61, %v1784_v27  ;;  %v1451_v30 = vadd.f32 %v1419_v41, %v1353_v7  ;;  %v1025_v44 = vmul.f32 %v2912_v40, %v3367_v45 }
 0x117   : > { %v1254_v52 = vadd.f32 %v1222_v21, %v1156_v33  ;;  %v701_v3 = vmul.f32 %v2782_v34, %v631_v28  ;;  %v1517_v19 = vmul.f32 %v3021_v51, %v3200_v13  ;;  %v1123_v58 = vmul.f32 %v2924_v47, %v3376_v62  ;;  %v2411_v34 = vld [vmem:[%s4131_s3] ss:$0 sm:$0xff]  ;;  %v3430_v28 = vld [vmem:[#allocation2 + $0xa9] sm:$0xff] }
 0x118   : > { %v1783_v23 = vmul.f32 %v3138_v50, %v1747_v9  ;;  %v1550_v17 = vadd.f32 %v1518_v35, %v1451_v30  ;;  %v1057_v63 = vadd.f32 %v1025_v44, %v927_v16  ;;  %v1221_v20 = vmul.f32 %v2942_v56, %v3302_v14  ;;  %v3428_v16 = vld [vmem:[#allocation2 + $0xb2] sm:$0xff]  ;;  %4174 = vst [vmem:[#allocation8_spill] sm:$0xff] %v3430_v28 }
 0x119   : > { %2279 = vmatpush.xpose.msk.msrb.mxu2 %vm786_vm1, %v1855_v5  ;;  %v1352_v41 = vadd.f32 %v1320_v26, %v1254_v52  ;;  %v737_v13 = vadd.f32 %v2411_v34, %v701_v3  ;;  %v1615_v31 = vmul.f32 %v3051_v22, %v3206_v59  ;;  %v1713_v5 = vmul.f32 %v3062_v32, %v3214_v46  ;;  %v3421_v26 = vld [vmem:[#allocation2 + $0xa8] sm:$0xff] }
 0x11a   : > { %v3406_v27 = vadd.f32 %v3155_v61, %v1783_v23  ;;  %v1648_v10 = vadd.f32 %v1616_v11, %v1550_v17  ;;  %v1155_v55 = vadd.f32 %v1123_v58, %v1057_v63  ;;  %v1319_v6 = vmul.f32 %v2958_v2, %v3312_v29 }
 0x11b   : > { %v1450_v21 = vadd.f32 %v1418_v53, %v1352_v41  ;;  %v769_v35 = vmax.f32 %v737_v13, 0.0  ;;  %v1852_v7 = vmax.f32 %v3385_v57, 0.0  ;;  %v1417_v33 = vmul.f32 %v2985_v18, %v3314_v1  ;;  %v3432_v57 = vld [vmem:[#allocation2 + $0xaa] sm:$0xff] }
 0x11c   : > { %v924_v59 = vmul.f32 %v2907_v39, %v3400_v54  ;;  %v1746_v46 = vadd.f32 %v1714_v43, %v1648_v10  ;;  %v1253_v9 = vadd.f32 %v1221_v20, %v1155_v55  ;;  %v1022_v53 = vmul.f32 %v2912_v40, %v3412_v15  ;;  %4175 = vst [vmem:[#allocation9_spill] sm:$0xff] %v3432_v57 }
 0x11d   : > { %2280 = vmatpush.xpose.msk.msrb.mxu2 %vm786_vm1, %v1854_v25  ;;  %v1549_v11 = vadd.f32 %v1517_v19, %v1450_v21  ;;  %858 = vst.msk [vmem:[#allocation2 + $0xc9] sm:$0xff] %vm786_vm1, %v769_v35  ;;  %v1851_v30 = vmax.f32 %v3406_v27, 0.0  ;;  %v1516_v12 = vmul.f32 %v3021_v51, %v3234_v8  ;;  %v1614_v25 = vmul.f32 %v3051_v22, %v3236_v60  ;;  %v3443_v19 = vld [vmem:[#allocation2 + $0xc0] sm:$0xff] }
 0x11e   : > { %v1712_v43 = vmul.f32 %v3062_v32, %v3238_v49  ;;  %v1782_v52 = vmul.f32 %v3138_v50, %v1746_v46  ;;  %v1351_v3 = vadd.f32 %v1319_v6, %v1253_v9  ;;  %v1054_v23 = vadd.f32 %v1022_v53, %v924_v59  ;;  %v3453_v49 = vld [vmem:[#allocation2 + $0xc1] sm:$0xff] }
 0x11f   : > { %v1647_v44 = vadd.f32 %v1615_v31, %v1549_v11  ;;  %v1120_v58 = vmul.f32 %v2924_v47, %v3428_v16  ;;  %v923_v17 = vmul.f32 %v2907_v39, %v3421_v26  ;;  %v1021_v8 = vmul.f32 %v2912_v40, %v3430_v28 }
 0x120   : > { %v1119_v60 = vmul.f32 %v2924_v47, %v3432_v57  ;;  %v1818_v41 = vadd.f32 %v3155_v61, %v1782_v52  ;;  %v1449_v20 = vadd.f32 %v1417_v33, %v1351_v3  ;;  %v1513_v34 = vmul.f32 %v3021_v51, %v3331_v4 }
 0x121   : > { %2281 = vmatpush.xpose.msk.msrb.mxu2 %vm786_vm1, %v1853_v24  ;;  %v1745_v63 = vadd.f32 %v1713_v5, %v1647_v44  ;;  %v3461_v13 = vmul.f32 %v3051_v22, %v3333_v36  ;;  %v3465_v27 = vmul.f32 %v3062_v32, %v3338_v0  ;;  %v1053_v31 = vadd.f32 %v1021_v8, %v923_v17  ;;  %v3483_v44 = vld [vmem:[#allocation2 + $0x98] sm:$0xff] }
 0x122   : > { %v1217_v10 = vmul.f32 %v2942_v56, %v3443_v19  ;;  %v1548_v21 = vadd.f32 %v1516_v12, %v1449_v20  ;;  %v1152_v5 = vadd.f32 %v1120_v58, %v1054_v23  ;;  %v1315_v55 = vmul.f32 %v2958_v2, %v3453_v49  ;;  %4176 = vst [vmem:[#allocation6_spill] sm:$0xff] %v3483_v44  ;;  %v3491_v8 = vld [vmem:[#allocation2 + $0x99] sm:$0xff] }
 0x123   : > { %v1781_v24 = vmul.f32 %v3138_v50, %v1745_v63  ;;  %v1850_v6 = vmax.f32 %v1818_v41, 0.0  ;;  %v1151_v35 = vadd.f32 %v1119_v60, %v1053_v31  ;;  %v1512_v33 = vmul.f32 %v3021_v51, %v3361_v48  ;;  %4177 = vst [vmem:[#allocation7_spill] sm:$0xff] %v3491_v8 }
 0x124   : > { %v1610_v59 = vmul.f32 %v3051_v22, %v3367_v45  ;;  %v1646_v46 = vadd.f32 %v1614_v25, %v1548_v21  ;;  %v1184_v11 = vld [vmem:[#allocation2 + $0xc8] sm:$0xff]  ;;  %v1708_v53 = vmul.f32 %v3062_v32, %v3376_v62  ;;  %v1220_v12 = vmul.f32 %v2942_v56, %v3331_v4 }
 0x125   : > { %2282 = vmatpush.xpose.msk.msrb.mxu2 %vm786_vm1, %v1852_v7  ;;  %v1282_v9 = vld [vmem:[#allocation2 + $0xc9] sm:$0xff]  ;;  %v1318_v52 = vmul.f32 %v2958_v2, %v3333_v36  ;;  %v1817_v3 = vadd.f32 %v3155_v61, %v1781_v24  ;;  %v1218_v23 = vmul.f32 %v2942_v56, %v1184_v11  ;;  %v1249_v7 = vadd.f32 %v1217_v10, %v1151_v35  ;;  %v3500_v24 = vld [vmem:[#allocation2 + $0x9a] sm:$0xff] }
 0x126   : > { %v1380_v58 = vld [vmem:[#allocation2 + $0xca] sm:$0xff]  ;;  %v3487_v25 = vld [vmem:[#allocation2 + $0xc2] sm:$0xff]  ;;  %v1416_v17 = vmul.f32 %v2985_v18, %v3338_v0  ;;  %v1744_v60 = vadd.f32 %v1712_v43, %v1646_v46  ;;  %v926_v36 = vmul.f32 %v2907_v39, %v1184_v11  ;;  %v1515_v41 = vmul.f32 %v3021_v51, %v3270_v38 }
 0x127   : > { %v1413_v4 = vmul.f32 %v2985_v18, %v3487_v25  ;;  %v1250_v63 = vadd.f32 %v1218_v23, %v1152_v5  ;;  %v1316_v20 = vmul.f32 %v2958_v2, %v1282_v9  ;;  %v1347_v31 = vadd.f32 %v1315_v55, %v1249_v7 }
 0x128   : > { %v1024_v10 = vmul.f32 %v2912_v40, %v1282_v9  ;;  %v1780_v0 = vmul.f32 %v3138_v50, %v1744_v60  ;;  %v1414_v43 = vmul.f32 %v2985_v18, %v1380_v58  ;;  %v922_v21 = vmul.f32 %v2907_v39, %v3483_v44 }
 0x129   : > { %2283 = vmatpush.xpose.msk.msrb.mxu2 %vm786_vm1, %v1851_v30  ;;  %v1020_v38 = vmul.f32 %v2912_v40, %v3491_v8  ;;  %v1348_v5 = vadd.f32 %v1316_v20, %v1250_v63  ;;  %v1445_v35 = vadd.f32 %v1413_v4, %v1347_v31  ;;  %v1122_v55 = vmul.f32 %v2924_v47, %v1380_v58 }
 0x12a   : > { %v1056_v46 = vadd.f32 %v1024_v10, %v926_v36  ;;  %v1613_v23 = vmul.f32 %v3051_v22, %v3272_v37  ;;  %v1118_v30 = vmul.f32 %v2924_v47, %v3500_v24  ;;  %v1216_v60 = vmul.f32 %v2942_v56, %v3400_v54 }
 0x12b   : > { %v1052_v7 = vadd.f32 %v1020_v38, %v922_v21  ;;  %v1816_v44 = vadd.f32 %v3155_v61, %v1780_v0  ;;  %v1446_v57 = vadd.f32 %v1414_v43, %v1348_v5  ;;  %v1544_v28 = vadd.f32 %v1512_v33, %v1445_v35 }
 0x12c   : > { %v1154_v8 = vadd.f32 %v1122_v55, %v1056_v46  ;;  %v1849_v4 = vmax.f32 %v1817_v3, 0.0  ;;  %v1711_v36 = vmul.f32 %v3062_v32, %v3279_v42  ;;  %v1314_v37 = vmul.f32 %v2958_v2, %v3412_v15 }
 0x12d   : > { %2284 = vmatpush.xpose.msk.msrb.mxu2 %vm786_vm1, %v1850_v6  ;;  %v1150_v63 = vadd.f32 %v1118_v30, %v1052_v7  ;;  %v1545_v20 = vadd.f32 %v1513_v34, %v1446_v57  ;;  %v1642_v31 = vadd.f32 %v1610_v59, %v1544_v28  ;;  %v1412_v21 = vmul.f32 %v2985_v18, %v3428_v16 }
 0x12e   : > { %v1252_v10 = vadd.f32 %v1220_v12, %v1154_v8  ;;  %v925_v33 = vmul.f32 %v2907_v39, %v3443_v19  ;;  %v1023_v6 = vmul.f32 %v2912_v40, %v3453_v49  ;;  %v1121_v42 = vmul.f32 %v2924_v47, %v3487_v25  ;;  %v3534_v39 = vld [vmem:[#allocation2 + $0x90] sm:$0xff] }
 0x12f   : > { %v1248_v0 = vadd.f32 %v1216_v60, %v1150_v63  ;;  %v1848_v3 = vmax.f32 %v1816_v44, 0.0  ;;  %v1643_v43 = vadd.f32 %v3461_v13, %v1545_v20  ;;  %v1740_v38 = vadd.f32 %v1708_v53, %v1642_v31  ;;  %v3539_v13 = vld [vmem:[#allocation2 + $0x91] sm:$0xff]  ;;  %v3579_v31 = vld [vmem:[%s4132_s4 + $0x3] ss:$0 sm:$0xff] }
 0x130   : > { %v1350_v57 = vadd.f32 %v1318_v52, %v1252_v10  ;;  %v1511_v34 = vmul.f32 %v3021_v51, %v1184_v11  ;;  %v1609_v59 = vmul.f32 %v3051_v22, %v1282_v9  ;;  %v1055_v12 = vadd.f32 %v1023_v6, %v925_v33  ;;  %v3541_v53 = vld [vmem:[#allocation2 + $0x92] sm:$0xff] }
 0x131   : > { %2285 = vmatpush.xpose.msk.msrb.mxu2 %vm786_vm1, %v1849_v4  ;;  %v1346_v28 = vadd.f32 %v1314_v37, %v1248_v0  ;;  %v1741_v40 = vadd.f32 %v3465_v27, %v1643_v43  ;;  %v1776_v8 = vmul.f32 %v3138_v50, %v1740_v38  ;;  %v1707_v44 = vmul.f32 %v3062_v32, %v1380_v58  ;;  %v3552_v58 = vld [vmem:[%s4132_s4] ss:$0 sm:$0xff]  ;;  %v3591_v43 = vld [vmem:[#allocation2 + $0x82] sm:$0xff] }
 0x132   : > { %v1448_v47 = vadd.f32 %v1416_v17, %v1350_v57  ;;  %v1153_v5 = vadd.f32 %v1121_v42, %v1055_v12  ;;  %v1219_v11 = vmul.f32 %v2942_v56, %v3361_v48  ;;  %v1317_v9 = vmul.f32 %v2958_v2, %v3367_v45  ;;  %v3560_v2 = vld [vmem:[%s4132_s4 + $0x1] ss:$0 sm:$0xff]  ;;  %v3567_v45 = vld [vmem:[%s4132_s4 + $0x2] ss:$0 sm:$0xff] }
 0x133   : > { %v1444_v52 = vadd.f32 %v1412_v21, %v1346_v28  ;;  %v1777_v35 = vmul.f32 %v3138_v50, %v1741_v40  ;;  %v1812_v27 = vadd.f32 %v3155_v61, %v1776_v8  ;;  %v921_v17 = vmul.f32 %v3552_v58, %v3534_v39  ;;  %v3583_v21 = vld [vmem:[#allocation2 + $0x80] sm:$0xff]  ;;  %v4179_v8 = vld [vmem:[#allocation9_spill] sm:$0xff] }
 0x134   : > { %v1547_v46 = vadd.f32 %v1515_v41, %v1448_v47  ;;  %v1251_v56 = vadd.f32 %v1219_v11, %v1153_v5  ;;  %v1019_v48 = vmul.f32 %v3560_v2, %v3539_v13  ;;  %v1117_v41 = vmul.f32 %v3567_v45, %v3541_v53  ;;  %v4178_v57 = vld [vmem:[#allocation8_spill] sm:$0xff]  ;;  %v4180_v11 = vld [vmem:[#allocation6_spill] sm:$0xff] }
 0x135   : > { %2286 = vmatpush.xpose.msk.msrb.mxu2 %vm786_vm1, %v1848_v3  ;;  %v1543_v55 = vadd.f32 %v1511_v34, %v1444_v52  ;;  %v1813_v7 = vadd.f32 %v3155_v61, %v1777_v35  ;;  %v1415_v60 = vmul.f32 %v2985_v18, %v3376_v62  ;;  %v1514_v4 = vmul.f32 %v3021_v51, %v3302_v14  ;;  %v3610_v40 = vld [vmem:[%s4132_s4 + $0x5] ss:$0 sm:$0xff] }
 0x136   : > { %v1645_v30 = vadd.f32 %v1613_v23, %v1547_v46  ;;  %v1349_v37 = vadd.f32 %v1317_v9, %v1251_v56  ;;  %v1051_v20 = vadd.f32 %v1019_v48, %v921_v17  ;;  %v1215_v10 = vmul.f32 %v3579_v31, %v3421_v26  ;;  %v3585_v23 = vld [vmem:[#allocation2 + $0x81] sm:$0xff]  ;;  %v3624_v56 = vld [vmem:[#allocation2 + $0x79] sm:$0xff] }
 0x137   : > { %v1641_v63 = vadd.f32 %v1609_v59, %v1543_v55  ;;  %v1845_v0 = vmax.f32 %v1813_v7, 0.0  ;;  %v1612_v14 = vmul.f32 %v3051_v22, %v3312_v29  ;;  %v1710_v62 = vmul.f32 %v3062_v32, %v3314_v1  ;;  %v3622_v55 = vld [vmem:[#allocation2 + $0x78] sm:$0xff] }
 0x138   : > { %v1743_v18 = vadd.f32 %v1711_v36, %v1645_v30  ;;  %v1844_v33 = vmax.f32 %v1812_v27, 0.0  ;;  %v1447_v42 = vadd.f32 %v1415_v60, %v1349_v37  ;;  %v1149_v3 = vadd.f32 %v1117_v41, %v1051_v20  ;;  %v3598_v36 = vld [vmem:[%s4132_s4 + $0x4] ss:$0 sm:$0xff]  ;;  %v3626_v48 = vld [vmem:[#allocation2 + $0x7a] sm:$0xff] }
 0x139   : > { %v1739_v6 = vadd.f32 %v1707_v44, %v1641_v63  ;;  %2255 = vmatpush.xpose.msk.msra.mxu1 %vm786_vm1, %v1845_v0  ;;  %v1313_v29 = vmul.f32 %v3598_v36, %v4178_v57  ;;  %v920_v1 = vmul.f32 %v3552_v58, %v3583_v21  ;;  %v1018_v28 = vmul.f32 %v3560_v2, %v3585_v23  ;;  %v4181_v37 = vld [vmem:[#allocation7_spill] sm:$0xff] }
 0x13a   : > { %v1779_v38 = vmul.f32 %v3138_v50, %v1743_v18  ;;  %v1546_v59 = vadd.f32 %v1514_v4, %v1447_v42  ;;  %v1247_v12 = vadd.f32 %v1215_v10, %v1149_v3  ;;  %v1411_v47 = vmul.f32 %v3610_v40, %v4179_v8  ;;  %v3653_v3 = vld [vmem:[%s4132_s4 + $0x6] ss:$0 sm:$0xff] }
 0x13b   : > { %v1775_v34 = vmul.f32 %v3138_v50, %v1739_v6  ;;  %v1050_v52 = vadd.f32 %v1018_v28, %v920_v1  ;;  %v1116_v5 = vmul.f32 %v3567_v45, %v3591_v43  ;;  %v1214_v9 = vmul.f32 %v3579_v31, %v4180_v11  ;;  %v3647_v6 = vld [vmem:[#allocation2 + $0x69] sm:$0xff] }
 0x13c   : > { %v1815_v44 = vadd.f32 %v3155_v61, %v1779_v38  ;;  %v1644_v27 = vadd.f32 %v1612_v14, %v1546_v59  ;;  %v1345_v46 = vadd.f32 %v1313_v29, %v1247_v12  ;;  %v1510_v17 = vmul.f32 %v3021_v51, %v3443_v19 }
 0x13d   : > { %v1811_v35 = vadd.f32 %v3155_v61, %v1775_v34  ;;  %2256 = vmatpush.xpose.msk.msra.mxu1 %vm786_vm1, %v1844_v33  ;;  %v1608_v7 = vmul.f32 %v3051_v22, %v3453_v49  ;;  %v1148_v30 = vadd.f32 %v1116_v5, %v1050_v52  ;;  %v1312_v20 = vmul.f32 %v3598_v36, %v4181_v37  ;;  %v3645_v33 = vld [vmem:[#allocation2 + $0x68] sm:$0xff] }
 0x13e   : > { %v1847_v41 = vmax.f32 %v1815_v44, 0.0  ;;  %v1742_v4 = vadd.f32 %v1710_v62, %v1644_v27  ;;  %v1443_v63 = vadd.f32 %v1411_v47, %v1345_v46  ;;  %v919_v19 = vmul.f32 %v3552_v58, %v3622_v55 }
 0x13f   : > { %v1843_v60 = vmax.f32 %v1811_v35, 0.0  ;;  %v1246_v51 = vadd.f32 %v1214_v9, %v1148_v30  ;;  %v1017_v10 = vmul.f32 %v3560_v2, %v3624_v56  ;;  %v1115_v0 = vmul.f32 %v3567_v45, %v3626_v48 }
 0x140   : > { %2287 = vmatpush.xpose.msk.msrb.mxu2 %vm786_vm1, %v1847_v41  ;;  %v1778_v49 = vmul.f32 %v3138_v50, %v1742_v4  ;;  %v1542_v18 = vadd.f32 %v1510_v17, %v1443_v63  ;;  %v1706_v14 = vmul.f32 %v3062_v32, %v3487_v25  ;;  %v1410_v62 = vmul.f32 %v3610_v40, %v3500_v24  ;;  %v3659_v25 = vld [vmem:[#allocation2 + $0x6a] sm:$0xff]  ;;  %v3676_v17 = vld [vmem:[#allocation2 + $0x60] sm:$0xff] }
 0x141   : > { %2257 = vmatpush.xpose.msk.msra.mxu1 %vm786_vm1, %v1843_v60  ;;  %v1344_v42 = vadd.f32 %v1312_v20, %v1246_v51  ;;  %v1509_v38 = vmul.f32 %v3653_v3, %v3400_v54  ;;  %v1049_v29 = vadd.f32 %v1017_v10, %v919_v19  ;;  %v1213_v32 = vmul.f32 %v3579_v31, %v3534_v39  ;;  %v3678_v41 = vld [vmem:[#allocation2 + $0x61] sm:$0xff] }
 0x142   : > { %v1814_v1 = vadd.f32 %v3155_v61, %v1778_v49  ;;  %v1640_v28 = vadd.f32 %v1608_v7, %v1542_v18  ;;  %v1607_v34 = vmul.f32 %v3051_v22, %v3412_v15  ;;  %v1311_v59 = vmul.f32 %v3598_v36, %v3539_v13  ;;  %v3680_v7 = vld [vmem:[#allocation2 + $0x62] sm:$0xff]  ;;  %v3703_v18 = vld [vmem:[%s2633_s15 + $0xf8] sm:$0xff] }
 0x143   : > { %v1442_v12 = vadd.f32 %v1410_v62, %v1344_v42  ;;  %v1147_v47 = vadd.f32 %v1115_v0, %v1049_v29  ;;  %v918_v54 = vmul.f32 %v3552_v58, %v3645_v33  ;;  %v1016_v44 = vmul.f32 %v3560_v2, %v3647_v6  ;;  %v3687_v60 = vld [vmem:[%s4132_s4 + $0x8] ss:$0 sm:$0xff]  ;;  %v3696_v20 = vld [vmem:[%s4132_s4 + $0x7] ss:$0 sm:$0xff]  ;;  %v3716_v29 = vld [vmem:[#allocation2 + $0x50] sm:$0xff] }
 0x144   : > { %v1846_v52 = vmax.f32 %v1814_v1, 0.0  ;;  %v1738_v5 = vadd.f32 %v1706_v14, %v1640_v28  ;;  %v1409_v9 = vmul.f32 %v3610_v40, %v3541_v53  ;;  %v1114_v35 = vmul.f32 %v3567_v45, %v3659_v25 }
 0x145   : > { %v1541_v22 = vadd.f32 %v1509_v38, %v1442_v12  ;;  %v1245_v15 = vadd.f32 %v1213_v32, %v1147_v47  ;;  %v1048_v27 = vadd.f32 %v1016_v44, %v918_v54  ;;  %v1212_v46 = vmul.f32 %v3579_v31, %v3583_v21 }
 0x146   : > { %2288 = vmatpush.xpose.msk.msrb.mxu2 %vm786_vm1, %v1846_v52  ;;  %v1774_v30 = vmul.f32 %v3138_v50, %v1738_v5  ;;  %v1705_v4 = vmul.f32 %v3687_v60, %v3428_v16  ;;  %v1508_v63 = vmul.f32 %v3653_v3, %v3421_v26  ;;  %v1606_v51 = vmul.f32 %v3696_v20, %v4178_v57  ;;  %v3727_v52 = vld [vmem:[#allocation2 + $0x52] sm:$0xff] }
 0x147   : > { %v1639_v19 = vadd.f32 %v1607_v34, %v1541_v22  ;;  %v1343_v10 = vadd.f32 %v1311_v59, %v1245_v15  ;;  %v1704_v0 = vmul.f32 %v3687_v60, %v4179_v8  ;;  %v1146_v49 = vadd.f32 %v1114_v35, %v1048_v27  ;;  %v3722_v59 = vld [vmem:[#allocation2 + $0x51] sm:$0xff] }
 0x148   : > { %v1810_v26 = vadd.f32 %v3155_v61, %v1774_v30  ;;  %v917_v16 = vmul.f32 %v3552_v58, %v3676_v17  ;;  %v1015_v14 = vmul.f32 %v3560_v2, %v3678_v41  ;;  %v1113_v57 = vmul.f32 %v3567_v45, %v3680_v7  ;;  %v3730_v5 = vld [vmem:[%s2633_s15 + $0xf0] sm:$0xff] }
 0x149   : > { %v1737_v62 = vadd.f32 %v1705_v4, %v1639_v19  ;;  %v1441_v8 = vadd.f32 %v1409_v9, %v1343_v10  ;;  %v1244_v42 = vadd.f32 %v1212_v46, %v1146_v49  ;;  %v1310_v38 = vmul.f32 %v3598_v36, %v3585_v23 }
 0x14a   : > { %2336 = vmatpush.xpose.msk.msra.mxu2 %vm472_vm0, %v3703_v18  ;;  %v1842_v32 = vmax.f32 %v1810_v26, 0.0  ;;  %v1408_v1 = vmul.f32 %v3610_v40, %v3591_v43  ;;  %v1047_v28 = vadd.f32 %v1015_v14, %v917_v16  ;;  %v1211_v34 = vmul.f32 %v3579_v31, %v3622_v55  ;;  %v3750_v14 = vld [vmem:[#allocation2 + $0x48] sm:$0xff] }
 0x14b   : > { %v1773_v12 = vmul.f32 %v3138_v50, %v1737_v62  ;;  %v1540_v47 = vadd.f32 %v1508_v63, %v1441_v8  ;;  %v1342_v54 = vadd.f32 %v1310_v38, %v1244_v42  ;;  %v1507_v44 = vmul.f32 %v3653_v3, %v4180_v11  ;;  %v3757_v62 = vld [vmem:[%s2633_s15 + $0xe8] sm:$0xff] }
 0x14c   : > { %2258 = vmatpush.xpose.msk.msra.mxu1 %vm786_vm1, %v1842_v32  ;;  %v1605_v9 = vmul.f32 %v3696_v20, %v4181_v37  ;;  %v1145_v35 = vadd.f32 %v1113_v57, %v1047_v28  ;;  %v1309_v22 = vmul.f32 %v3598_v36, %v3624_v56  ;;  %v916_v15 = vmul.f32 %v3552_v58, %v3716_v29  ;;  %v3754_v57 = vld [vmem:[#allocation2 + $0x4a] sm:$0xff] }
 0x14d   : > { %v1809_v11 = vadd.f32 %v3155_v61, %v1773_v12  ;;  %v1638_v27 = vadd.f32 %v1606_v51, %v1540_v47  ;;  %v1440_v46 = vadd.f32 %v1408_v1, %v1342_v54  ;;  %v1014_v30 = vmul.f32 %v3560_v2, %v3722_v59  ;;  %v3752_v51 = vld [vmem:[#allocation2 + $0x49] sm:$0xff] }
 0x14e   : > { %2337 = vmatpush.xpose.msk.msra.mxu2 %vm472_vm0, %v3730_v5  ;;  %v1243_v4 = vadd.f32 %v1211_v34, %v1145_v35  ;;  %v1407_v63 = vmul.f32 %v3610_v40, %v3626_v48  ;;  %v1112_v37 = vmul.f32 %v3567_v45, %v3727_v52  ;;  %v1210_v19 = vmul.f32 %v3579_v31, %v3645_v33 }
 0x14f   : > { %v1841_v10 = vmax.f32 %v1809_v11, 0.0  ;;  %v1736_v49 = vadd.f32 %v1704_v0, %v1638_v27  ;;  %v1539_v26 = vadd.f32 %v1507_v44, %v1440_v46  ;;  %v1046_v16 = vadd.f32 %v1014_v30, %v916_v15  ;;  %v3789_v11 = vld [vmem:[#allocation2 + $0x38] sm:$0xff]  ;;  %v3796_v30 = vld [vmem:[%s4133_s5] ss:$0 sm:$0xff] }
 0x150   : > { %v1703_v8 = vmul.f32 %v3687_v60, %v3500_v24  ;;  %v1341_v42 = vadd.f32 %v1309_v22, %v1243_v4  ;;  %v1506_v0 = vmul.f32 %v3653_v3, %v3534_v39  ;;  %v1604_v38 = vmul.f32 %v3696_v20, %v3539_v13  ;;  %v3791_v27 = vld [vmem:[#allocation2 + $0x39] sm:$0xff] }
 0x151   : > { %2259 = vmatpush.xpose.msk.msra.mxu1 %vm786_vm1, %v1841_v10  ;;  %v1772_v32 = vmul.f32 %v3138_v50, %v1736_v49  ;;  %v1637_v1 = vadd.f32 %v1605_v9, %v1539_v26  ;;  %v1702_v28 = vmul.f32 %v3687_v60, %v3541_v53  ;;  %v1144_v34 = vadd.f32 %v1112_v37, %v1046_v16  ;;  %v3781_v9 = vld [vmem:[%s2633_s15 + $0xe0] sm:$0xff] }
 0x152   : > { %2338 = vmatpush.xpose.msk.msra.mxu2 %vm472_vm0, %v3757_v62  ;;  %v1439_v12 = vadd.f32 %v1407_v63, %v1341_v42  ;;  %v915_v24 = vmul.f32 %v3552_v58, %v3750_v14  ;;  %v1013_v47 = vmul.f32 %v3560_v2, %v3752_v51  ;;  %v1111_v39 = vmul.f32 %v3567_v45, %v3754_v57 }
 0x153   : > { %v1808_v13 = vadd.f32 %v3155_v61, %v1772_v32  ;;  %v1735_v54 = vadd.f32 %v1703_v8, %v1637_v1  ;;  %v1242_v44 = vadd.f32 %v1210_v19, %v1144_v34  ;;  %v1308_v50 = vmul.f32 %v3598_v36, %v3647_v6  ;;  %v3801_v19 = vld [vmem:[#allocation2 + $0x3a] sm:$0xff] }
 0x154   : > { %v1538_v53 = vadd.f32 %v1506_v0, %v1439_v12  ;;  %v1406_v35 = vmul.f32 %v3610_v40, %v3659_v25  ;;  %v1045_v22 = vadd.f32 %v1013_v47, %v915_v24  ;;  %v1209_v15 = vmul.f32 %v3579_v31, %v3676_v17  ;;  %v3818_v34 = vld [vmem:[%s2633_s15 + $0xd8] sm:$0xff] }
 0x155   : > { %v1840_v46 = vmax.f32 %v1808_v13, 0.0  ;;  %v1771_v4 = vmul.f32 %v3796_v30, %v1735_v54  ;;  %v1340_v63 = vadd.f32 %v1308_v50, %v1242_v44  ;;  %v1505_v37 = vmul.f32 %v3653_v3, %v3583_v21 }
 0x156   : > { %2339 = vmatpush.xpose.msk.msra.mxu2 %vm472_vm0, %v3781_v9  ;;  %v1636_v10 = vadd.f32 %v1604_v38, %v1538_v53  ;;  %v1603_v49 = vmul.f32 %v3696_v20, %v3585_v23  ;;  %v1143_v26 = vadd.f32 %v1111_v39, %v1045_v22  ;;  %v1307_v16 = vmul.f32 %v3598_v36, %v3678_v41  ;;  %v3824_v39 = vld [vmem:[#allocation2 + $0x30] sm:$0xff] }
 0x157   : > { %2260 = vmatpush.xpose.msk.msra.mxu1 %vm786_vm1, %v1840_v46  ;;  %v1807_v8 = vadd.f32 %v3155_v61, %v1771_v4  ;;  %v1438_v42 = vadd.f32 %v1406_v35, %v1340_v63  ;;  %v914_v0 = vmul.f32 %v3552_v58, %v3789_v11  ;;  %v1012_v21 = vmul.f32 %v3560_v2, %v3791_v27  ;;  %v3833_v53 = vld [vmem:[#allocation2 + $0x32] sm:$0xff] }
 0x158   : > { %v1734_v32 = vadd.f32 %v1702_v28, %v1636_v10  ;;  %v1241_v38 = vadd.f32 %v1209_v15, %v1143_v26  ;;  %v1405_v23 = vmul.f32 %v3610_v40, %v3680_v7  ;;  %v1110_v1 = vmul.f32 %v3567_v45, %v3801_v19  ;;  %v3826_v28 = vld [vmem:[#allocation2 + $0x31] sm:$0xff] }
 0x159   : > { %v1839_v61 = vmax.f32 %v1807_v8, 0.0  ;;  %v1537_v12 = vadd.f32 %v1505_v37, %v1438_v42  ;;  %v1044_v24 = vadd.f32 %v1012_v21, %v914_v0  ;;  %v1208_v47 = vmul.f32 %v3579_v31, %v3716_v29  ;;  %v3851_v10 = vld [vmem:[%s2633_s15 + $0xd0] sm:$0xff]  ;;  %v3861_v21 = vld [vmem:[#allocation2 + $0x20] sm:$0xff] }
 0x15a   : > { %2340 = vmatpush.xpose.msk.msra.mxu2 %vm472_vm0, %v3818_v34  ;;  %v1770_v13 = vmul.f32 %v3796_v30, %v1734_v32  ;;  %v1701_v54 = vmul.f32 %v3687_v60, %v3591_v43  ;;  %v1339_v44 = vadd.f32 %v1307_v16, %v1241_v38  ;;  %v1504_v50 = vmul.f32 %v3653_v3, %v3622_v55  ;;  %v3843_v43 = vld [vmem:[%s4134_s6] ss:$0 sm:$0xff]  ;;  %v3863_v32 = vld [vmem:[#allocation2 + $0x21] sm:$0xff] }
 0x15b   : > { %2261 = vmatpush.xpose.msk.msra.mxu1 %vm786_vm1, %v1839_v61  ;;  %v1635_v35 = vadd.f32 %v1603_v49, %v1537_v12  ;;  %v1602_v22 = vmul.f32 %v3696_v20, %v3624_v56  ;;  %v1700_v15 = vmul.f32 %v3687_v60, %v3626_v48  ;;  %v1142_v46 = vadd.f32 %v1110_v1, %v1044_v24  ;;  %v3870_v12 = vld [vmem:[#allocation2 + $0x22] sm:$0xff] }
 0x15c   : > { %v1806_v4 = vadd.f32 %v3843_v43, %v1770_v13  ;;  %v1437_v55 = vadd.f32 %v1405_v23, %v1339_v44  ;;  %v913_v63 = vmul.f32 %v3552_v58, %v3824_v39  ;;  %v1011_v37 = vmul.f32 %v3560_v2, %v3826_v28 }
 0x15d   : > { %v1733_v56 = vadd.f32 %v1701_v54, %v1635_v35  ;;  %v1240_v48 = vadd.f32 %v1208_v47, %v1142_v46  ;;  %v1306_v49 = vmul.f32 %v3598_v36, %v3722_v59  ;;  %v1109_v26 = vmul.f32 %v3567_v45, %v3833_v53  ;;  %v3883_v46 = vld [vmem:[%s2633_s15 + $0xc8] sm:$0xff] }
 0x15e   : > { %2341 = vmatpush.xpose.msk.msra.mxu2 %vm472_vm0, %v3851_v10  ;;  %v1838_v16 = vmax.f32 %v1806_v4, 0.0  ;;  %v1536_v8 = vadd.f32 %v1504_v50, %v1437_v55  ;;  %v1043_v42 = vadd.f32 %v1011_v37, %v913_v63  ;;  %v1207_v0 = vmul.f32 %v3579_v31, %v3750_v14 }
 0x15f   : > { %v1769_v38 = vmul.f32 %v3796_v30, %v1733_v56  ;;  %v1338_v23 = vadd.f32 %v1306_v49, %v1240_v48  ;;  %v1404_v1 = vmul.f32 %v3610_v40, %v3727_v52  ;;  %v1503_v61 = vmul.f32 %v3653_v3, %v3645_v33  ;;  %v3893_v49 = vld [vmem:[#allocation2 + $0x18] sm:$0xff] }
 0x160   : > { %2262 = vmatpush.xpose.msk.msra.mxu1 %vm786_vm1, %v1838_v16  ;;  %v1634_v24 = vadd.f32 %v1602_v22, %v1536_v8  ;;  %v1601_v47 = vmul.f32 %v3696_v20, %v3647_v6  ;;  %v1141_v13 = vadd.f32 %v1109_v26, %v1043_v42  ;;  %v1305_v54 = vmul.f32 %v3598_v36, %v3752_v51  ;;  %v3895_v26 = vld [vmem:[#allocation2 + $0x19] sm:$0xff] }
 0x161   : > { %v1805_v44 = vadd.f32 %v3843_v43, %v1769_v38  ;;  %v1436_v50 = vadd.f32 %v1404_v1, %v1338_v23  ;;  %v912_v35 = vmul.f32 %v3552_v58, %v3861_v21  ;;  %v1010_v33 = vmul.f32 %v3560_v2, %v3863_v32 }
 0x162   : > { %2342 = vmatpush.xpose.msk.msra.mxu2 %vm472_vm0, %v3883_v46  ;;  %v1732_v22 = vadd.f32 %v1700_v15, %v1634_v24  ;;  %v1239_v6 = vadd.f32 %v1207_v0, %v1141_v13  ;;  %v1403_v4 = vmul.f32 %v3610_v40, %v3754_v57  ;;  %v1108_v55 = vmul.f32 %v3567_v45, %v3870_v12  ;;  %v3902_v0 = vld [vmem:[#allocation2 + $0x1a] sm:$0xff] }
 0x163   : > { %v1837_v63 = vmax.f32 %v1805_v44, 0.0  ;;  %v1535_v37 = vadd.f32 %v1503_v61, %v1436_v50  ;;  %v1042_v56 = vadd.f32 %v1010_v33, %v912_v35  ;;  %v1206_v48 = vmul.f32 %v3579_v31, %v3789_v11 }
 0x164   : > { %v1768_v15 = vmul.f32 %v3796_v30, %v1732_v22  ;;  %v1699_v16 = vmul.f32 %v3687_v60, %v3659_v25  ;;  %v1337_v8 = vadd.f32 %v1305_v54, %v1239_v6  ;;  %v1502_v42 = vmul.f32 %v3653_v3, %v3676_v17  ;;  %v3915_v54 = vld [vmem:[%s2633_s15 + $0xc0] sm:$0xff]  ;;  %v876_v6 = vld [vmem:[#allocation2 + $0x8] sm:$0xff] }
 0x165   : > { %2263 = vmatpush.xpose.msk.msra.mxu1 %vm786_vm1, %v1837_v63  ;;  %v1633_v38 = vadd.f32 %v1601_v47, %v1535_v37  ;;  %v1600_v23 = vmul.f32 %v3696_v20, %v3678_v41  ;;  %v1698_v1 = vmul.f32 %v3687_v60, %v3680_v7  ;;  %v1140_v61 = vadd.f32 %v1108_v55, %v1042_v56 }
 0x166   : > { %v1804_v24 = vadd.f32 %v3843_v43, %v1768_v15  ;;  %v1435_v13 = vadd.f32 %v1403_v4, %v1337_v8  ;;  %v911_v25 = vmul.f32 %v3552_v58, %v3893_v49  ;;  %v1009_v17 = vmul.f32 %v3560_v2, %v3895_v26  ;;  %2343 = vmatpush.xpose.msk.msra.mxu2 %vm472_vm0, %v3915_v54  ;;  %v974_v4 = vld [vmem:[#allocation2 + $0x9] sm:$0xff] }
 0x167   : > { %v1731_v47 = vadd.f32 %v1699_v16, %v1633_v38  ;;  %v1238_v41 = vadd.f32 %v1206_v48, %v1140_v61  ;;  %v1304_v7 = vmul.f32 %v3598_v36, %v3791_v27  ;;  %v1107_v44 = vmul.f32 %v3567_v45, %v3902_v0  ;;  %v1072_v48 = vld [vmem:[#allocation2 + $0xa] sm:$0xff] }
 0x168   : > { %v1836_v50 = vmax.f32 %v1804_v24, 0.0  ;;  %v1534_v35 = vadd.f32 %v1502_v42, %v1435_v13  ;;  %v1041_v33 = vadd.f32 %v1009_v17, %v911_v25  ;;  %v1205_v22 = vmul.f32 %v3579_v31, %v3824_v39  ;;  %v3939_v25 = vld [vmem:[%s2633_s15 + $0xb8] sm:$0xff] }
 0x169   : > { %v1767_v55 = vmul.f32 %v3796_v30, %v1731_v47  ;;  %v1336_v63 = vadd.f32 %v1304_v7, %v1238_v41  ;;  %v1402_v37 = vmul.f32 %v3610_v40, %v3801_v19  ;;  %v1501_v56 = vmul.f32 %v3653_v3, %v3716_v29 }
 0x16a   : > { %2264 = vmatpush.xpose.msk.msra.mxu1 %vm786_vm1, %v1836_v50  ;;  %v1632_v15 = vadd.f32 %v1600_v23, %v1534_v35  ;;  %v1599_v16 = vmul.f32 %v3696_v20, %v3722_v59  ;;  %v1139_v8 = vadd.f32 %v1107_v44, %v1041_v33  ;;  %v1303_v42 = vmul.f32 %v3598_v36, %v3826_v28  ;;  %v875_v50 = vld [vmem:[#allocation2] sm:$0xff] }
 0x16b   : > { %v1803_v38 = vadd.f32 %v3843_v43, %v1767_v55  ;;  %v1434_v61 = vadd.f32 %v1402_v37, %v1336_v63  ;;  %v910_v24 = vmul.f32 %v3552_v58, %v876_v6  ;;  %v1008_v13 = vmul.f32 %v3560_v2, %v974_v4  ;;  %2344 = vmatpush.xpose.msk.msra.mxu2 %vm472_vm0, %v3939_v25  ;;  %v973_v35 = vld [vmem:[#allocation2 + $0x1] sm:$0xff] }
 0x16c   : > { %v1730_v29 = vadd.f32 %v1698_v1, %v1632_v15  ;;  %v1237_v23 = vadd.f32 %v1205_v22, %v1139_v8  ;;  %v1401_v59 = vmul.f32 %v3610_v40, %v3833_v53  ;;  %v1106_v17 = vmul.f32 %v3567_v45, %v1072_v48  ;;  %v1071_v4 = vld [vmem:[#allocation2 + $0x2] sm:$0xff]  ;;  %v3962_v8 = vld [vmem:[%s2633_s15 + $0xb0] sm:$0xff] }
 0x16d   : > { %v1835_v47 = vmax.f32 %v1803_v38, 0.0  ;;  %v1533_v41 = vadd.f32 %v1501_v56, %v1434_v61  ;;  %v1040_v7 = vadd.f32 %v1008_v13, %v910_v24  ;;  %v1204_v44 = vmul.f32 %v3579_v31, %v3861_v21 }
 0x16e   : > { %v1766_v33 = vmul.f32 %v3796_v30, %v1730_v29  ;;  %v1697_v1 = vmul.f32 %v3687_v60, %v3727_v52  ;;  %v1335_v22 = vadd.f32 %v1303_v42, %v1237_v23  ;;  %v1500_v6 = vmul.f32 %v3653_v3, %v3750_v14 }
 0x16f   : > { %2265 = vmatpush.xpose.msk.msra.mxu1 %vm786_vm1, %v1835_v47  ;;  %v1631_v55 = vadd.f32 %v1599_v16, %v1533_v41  ;;  %v1598_v63 = vmul.f32 %v3696_v20, %v3752_v51  ;;  %v1696_v21 = vmul.f32 %v3687_v60, %v3754_v57  ;;  %v1138_v37 = vadd.f32 %v1106_v17, %v1040_v7  ;;  %v3979_v17 = vld [vmem:[%s2633_s15 + $0xa8] sm:$0xff] }
 0x170   : > { %v1802_v56 = vadd.f32 %v3843_v43, %v1766_v33  ;;  %v1433_v48 = vadd.f32 %v1401_v59, %v1335_v22  ;;  %v909_v52 = vmul.f32 %v3552_v58, %v875_v50  ;;  %v1007_v15 = vmul.f32 %v3560_v2, %v973_v35  ;;  %2345 = vmatpush.xpose.msk.msra.mxu2 %vm472_vm0, %v3962_v8 }
 0x171   : > { %v1729_v14 = vadd.f32 %v1697_v1, %v1631_v55  ;;  %v1236_v16 = vadd.f32 %v1204_v44, %v1138_v37  ;;  %v1302_v51 = vmul.f32 %v3598_v36, %v3863_v32  ;;  %v1105_v57 = vmul.f32 %v3567_v45, %v1071_v4  ;;  %v2437_v37 = vld [vmem:[%s2633_s15 + $0x88] sm:$0xff] }
 0x172   : > { %v1834_v42 = vmax.f32 %v1802_v56, 0.0  ;;  %v1532_v38 = vadd.f32 %v1500_v6, %v1433_v48  ;;  %v1039_v61 = vadd.f32 %v1007_v15, %v909_v52  ;;  %v1203_v58 = vmul.f32 %v3579_v31, %v3893_v49  ;;  %v2435_v6 = vld [vmem:[%s2633_s15 + $0x98] sm:$0xff]  ;;  %v1863_v48 = vld [vmem:[%s4135_s7 + $0x8] sm:$0xff]  ;;  %v2438_v52 = vld [vmem:[%s2633_s15 + $0x80] sm:$0xff] }
 0x173   : > { %v1765_v2 = vmul.f32 %v3796_v30, %v1729_v14  ;;  %v1334_v24 = vadd.f32 %v1302_v51, %v1236_v16  ;;  %v1400_v13 = vmul.f32 %v3610_v40, %v3870_v12  ;;  %v1499_v29 = vmul.f32 %v3653_v3, %v3789_v11  ;;  %v2013_v15 = vld [vmem:[%s4136_s8 + $0x8] sm:$0xff]  ;;  %v2098_v14 = vld [vmem:[%s4139_s11] sm:$0xff] }
 0x174   : > { %2266 = vmatpush.xpose.msk.msra.mxu1 %vm786_vm1, %v1834_v42  ;;  %v1630_v32 = vadd.f32 %v1598_v63, %v1532_v38  ;;  %v1137_v23 = vadd.f32 %v1105_v57, %v1039_v61  ;;  %2346 = vmatpush.xpose.msk.msra.mxu2 %vm472_vm0, %v3979_v17  ;;  %v1301_v12 = vmul.f32 %v3598_v36, %v3895_v26  ;;  %v3996_v26 = vld [vmem:[%s2633_s15 + $0xa0] sm:$0xff] }
 0x175   : > { %v1801_v45 = vadd.f32 %v3843_v43, %v1765_v2  ;;  %v1432_v59 = vadd.f32 %v1400_v13, %v1334_v24  ;;  %v1399_v11 = vmul.f32 %v3610_v40, %v3902_v0  ;;  %v1597_v7 = vmul.f32 %v3696_v20, %v3791_v27 }
 0x176   : > { %v1728_v31 = vadd.f32 %v1696_v21, %v1630_v32  ;;  %v1235_v49 = vadd.f32 %v1203_v58, %v1137_v23  ;;  %v1498_v35 = vmul.f32 %v3653_v3, %v3824_v39  ;;  %v1695_v36 = vmul.f32 %v3687_v60, %v3801_v19 }
 0x177   : > { %v1833_v47 = vmax.f32 %v1801_v45, 0.0  ;;  %v1531_v41 = vadd.f32 %v1499_v29, %v1432_v59  ;;  %v1596_v3 = vmul.f32 %v3696_v20, %v3826_v28  ;;  %v1694_v39 = vmul.f32 %v3687_v60, %v3833_v53  ;;  %v1862_v20 = vld [vmem:[%s4135_s7] sm:$0xff]  ;;  %v2436_v28 = vld [vmem:[%s2633_s15 + $0x90] sm:$0xff]  ;;  %s4155_s15 = sand.u32 1, %s2493_s26  }
 0x178   : > { %v1764_v44 = vmul.f32 %v3796_v30, %v1728_v31  ;;  %v1333_v50 = vadd.f32 %v1301_v12, %v1235_v49  ;;  %2347 = vmatpush.xpose.msk.msra.mxu2 %vm472_vm0, %v3996_v26  ;;  %s2220_s21 = sshll.u32 %s4155_s15, 5  ;;  %s2153_s15 = sshll.u32 %s2150_s16, 4  ;;  %s2154_s15 = int_to_ptr.hbm [resolvable:$true] %s2153_s15 }
 0x179   : > { %2267 = vmatpush.xpose.msk.msra.mxu1 %vm786_vm1, %v1833_v47  ;;  %v1629_v33 = vadd.f32 %v1597_v7, %v1531_v41  ;;  %2289 = vmatmul.msk.f32.vlgmr.msrb.gmra.mxu2 %vm786_vm1, %v1862_v20  ;;  %s433_s22 = scalar_lea.vmem [#allocation3], %s2220_s21  ;;  %s4182_s21 = sand.u32 1, %s2493_s26  }
 0x17a   : > { %v1800_v40 = vadd.f32 %v3843_v43, %v1764_v44  ;;  %v1431_v27 = vadd.f32 %v1399_v11, %v1333_v50  ;;  %s2151_s20 = sshll.u32 %s433_s22, 4  ;;  %s2139_s0 = scalar_lea.sflag [#allocation4], %s4182_s21  ;;  %s2152_s20 = int_to_ptr.vmem [resolvable:$true] %s2151_s20 }
 0x17b   : > { %v1727_v0 = vadd.f32 %v1695_v36, %v1629_v33  ;;  %s2453_s1 = sshra.s32 %s2154_s15, 4  ;;  %s2454_s1 = int_to_ptr.hbm [resolvable:$true] %s2453_s1 }
 0x17c   : > { %v1832_v1 = vmax.f32 %v1800_v40, 0.0  ;;  %v1530_v22 = vadd.f32 %v1498_v35, %v1431_v27  ;;  %2348 = vmatpush.xpose.msk.msra.mxu2 %vm472_vm0, %v2435_v6  ;;  %s2455_s29 = scalar_lea.hbm %s2454_s1, 32  ;;  %p2460_p0 = scmp.lt.s32.totalorder %s2454_s1, %s4141_s13 }
 0x17d   : > { %v1763_v19 = vmul.f32 %v3796_v30, %v1727_v0  ;;  %p2456_p11 = scmp.ne.s32.totalorder %s2454_s1, %s2455_s29  ;;  %p2461_p1 = scmp.lt.s32.totalorder %s2459_s30, %s2455_s29 }
 0x17e   : > { %2268 = vmatpush.xpose.msk.msra.mxu1 %vm786_vm1, %v1832_v1  ;;  %v1628_v4 = vadd.f32 %v1596_v3, %v1530_v22 }
 0x17f   : > { %v1799_v55 = vadd.f32 %v3843_v43, %v1763_v19  ;;  %p2457_p12 = pnand %p2456_p11, %p2615_p5  ;;  %p2462_p2 = por %p2461_p1, %p2460_p0 }
 0x180   : > { %v1726_v63 = vadd.f32 %v1694_v39, %v1628_v4  ;;  %2349 = vmatpush.xpose.msk.msra.mxu2 %vm472_vm0, %v2436_v28 }
 0x181   : > { %v1831_v21 = vmax.f32 %v1799_v55, 0.0  ;;  %2290 = vmatmul.msk.f32.gmra.mxu2 %vm786_vm1, %v1863_v48  ;;  %p2458_p13 = pneg %p2457_p12 }
 0x182   : > { %v1762_v60 = vmul.f32 %v3796_v30, %v1726_v63  ;;  %v2044_v30 = vld [vmem:[%s4138_s10] sm:$0xff] }
 0x183   : > { %2269 = vmatpush.xpose.msk.msra.mxu1 %vm786_vm1, %v1831_v21  ;;  %2307 = vmatmul.msk.f32.vlgmr.msrb.gmra.mxu3 %vm472_vm0, %v2044_v30  ;;  %p2463_p3 = pnand %p2462_p2, %p2458_p13 }
 0x184   : > { %v1798_v53 = vadd.f32 %v3843_v43, %v1762_v60  ;;  %2350 = vmatpush.xpose.msk.msra.mxu2 %vm472_vm0, %v2437_v37  ;;  %v2504_v43 = vmov 0  }
 0x185   : > { %2396 = vset.pattern.permute.xlu1 %v2504_v43  ;;  %2395 = vset.pattern.permute.xlu0 %v2504_v43 }
 0x186   : > { %v1830_v56 = vmax.f32 %v1798_v53, 0.0  ;;  %2397 = vset.pattern.permute.xlu2 %v2504_v43 }
 0x187   : > { %2102 = vperm.xlu2 %2397, %v2098_v14  }
 0x188   : > { %2270 = vmatpush.xpose.msk.msra.mxu1 %vm786_vm1, %v1830_v56  ;;  %2351 = vmatpush.xpose.msk.msra.mxu2 %vm472_vm0, %v2438_v52 }
 0x18b   : > { %2271 = vmatmul.msk.f32.vlgmr.msra.gmra.mxu1 %vm786_vm1, %v1862_v20 }
 0x18c   : > { %2309 = vmatpush.xpose.msk.msrb.mxu1 %vm472_vm0, %v3703_v18  ;;  %v2045_v18 = vld [vmem:[%s4138_s10 + $0x8] sm:$0xff] }
 0x18d   : > { %2308 = vmatmul.msk.f32.gmra.mxu3 %vm472_vm0, %v2045_v18  ;;  %2326 = vmatmul.msk.f32.vlgmr.msra.gmra.mxu2 %vm472_vm0, %v2045_v18 }
 0x190   : > { %2310 = vmatpush.xpose.msk.msrb.mxu1 %vm472_vm0, %v3730_v5  ;;  %v2028_v5 = vld [vmem:[%s4137_s9] sm:$0xff] }
 0x191   : > { %2032 = vperm.xlu1 %2396, %v2028_v5  }
 0x193   : > { %2272 = vmatmul.msk.f32.gmra.mxu1 %vm786_vm1, %v1863_v48 }
 0x194   : > { %2311 = vmatpush.xpose.msk.msrb.mxu1 %vm472_vm0, %v3757_v62  ;;  %v2012_v62 = vld [vmem:[%s4136_s8] sm:$0xff] }
 0x195   : > { %2016 = vperm.xlu0 %2395, %v2012_v62  }
 0x198   : > { %2312 = vmatpush.xpose.msk.msrb.mxu1 %vm472_vm0, %v3781_v9  ;;  %v2029_v9 = vld [vmem:[%s4137_s9 + $0x8] sm:$0xff] }
 0x199   : > { %2037 = vperm.xlu1 %2396, %v2029_v9  }
 0x19c   : > { %2313 = vmatpush.xpose.msk.msrb.mxu1 %vm472_vm0, %v3818_v34  ;;  %v2119_v34 = vld [vmem:[%s4140_s12 + $0x8] sm:$0xff] }
 0x19d   : > { %2021 = vperm.xlu0 %2395, %v2013_v15  }
 0x1a0   : > { %2314 = vmatpush.xpose.msk.msrb.mxu1 %vm472_vm0, %v3851_v10  ;;  %v2118_v10 = vld [vmem:[%s4140_s12] sm:$0xff] }
 0x1a1   : > { %2127 = vperm.xlu1 %2396, %v2119_v34  }
 0x1a4   : > { %2315 = vmatpush.xpose.msk.msrb.mxu1 %vm472_vm0, %v3883_v46  ;;  %v2099_v46 = vld [vmem:[%s4139_s11 + $0x8] sm:$0xff] }
 0x1a5   : > { %2122 = vperm.xlu0 %2395, %v2118_v10   ;;  %2107 = vperm.xlu2 %2397, %v2099_v46  }
 0x1a8   : > { %2316 = vmatpush.xpose.msk.msrb.mxu1 %vm472_vm0, %v3915_v54 }
 0x1ac   : > { %2317 = vmatpush.xpose.msk.msrb.mxu1 %vm472_vm0, %v3939_v25 }
 0x1b0   : > { %2318 = vmatpush.xpose.msk.msrb.mxu1 %vm472_vm0, %v3962_v8 }
 0x1b4   : > { %2319 = vmatpush.xpose.msk.msrb.mxu1 %vm472_vm0, %v3979_v17 }
 0x1b8   : > { %2320 = vmatpush.xpose.msk.msrb.mxu1 %vm472_vm0, %v3996_v26 }
 0x1bc   : > { %2321 = vmatpush.xpose.msk.msrb.mxu1 %vm472_vm0, %v2435_v6 }
 0x1c0   : > { %2322 = vmatpush.xpose.msk.msrb.mxu1 %vm472_vm0, %v2436_v28 }
 0x1c4   : > { %2323 = vmatpush.xpose.msk.msrb.mxu1 %vm472_vm0, %v2437_v37 }
 0x1c8   : > { %2324 = vmatpush.xpose.msk.msrb.mxu1 %vm472_vm0, %v2438_v52 }
 0x1cb   : > { %2325 = vmatmul.msk.f32.vlgmr.msrb.gmra.mxu1 %vm472_vm0, %v2044_v30 }
 0x1e1   : > { %v2103_v8 = vpop.permute.xlu2 %2102 }
 0x1fc   : > { %v2006_v54 = vpop.f32.mrf.mxu2 }
 0x1ff   : > { %v2108_v23 = vpop.permute.xlu2 %2107 }
 0x203   : > { %v2033_v16 = vpop.permute.xlu1 %2032 }
 0x204   : > { %v2009_v57 = vpop.f32.mrf.mxu2 }
 0x206   : > { %v2069_v42 = vpop.f32.mrf.mxu3 }
 0x207   : > { %v2017_v51 = vpop.permute.xlu0 %2016  ;;  %v2110_v13 = vmul.f32 %v2103_v8, %v2069_v42 }
 0x208   : > { %v1983_v25 = vpop.f32.mrf.mxu1  ;;  %v2025_v36 = vmul.f32 %v2017_v51, %v2006_v54 }
 0x209   : > { %v2024_v38 = vmul.f32 %v2017_v51, %v1983_v25 }
 0x20a   : > { %v2041_v40 = vadd.f32 %v2033_v16, %v2025_v36 }
 0x20b   : > { %v2038_v58 = vpop.permute.xlu1 %2037  ;;  %v2040_v24 = vadd.f32 %v2033_v16, %v2024_v38 }
 0x20d   : > { %v2114_v11 = vadd.f32 %v2110_v13, %v2040_v24 }
 0x20f   : > { %v2022_v2 = vpop.permute.xlu0 %2021 }
 0x210   : > { %v1986_v61 = vpop.f32.mrf.mxu1  ;;  %v2027_v29 = vmul.f32 %v2022_v2, %v2009_v57  ;;  %v2072_v17 = vpop.f32.mrf.mxu3 }
 0x211   : > { %v2026_v32 = vmul.f32 %v2022_v2, %v1986_v61  ;;  %v2095_v31 = vpop.f32.mrf.mxu2  ;;  %v2112_v49 = vmul.f32 %v2108_v23, %v2072_v17 }
 0x212   : > { %v2043_v45 = vadd.f32 %v2038_v58, %v2027_v29  ;;  %v2113_v12 = vmul.f32 %v2108_v23, %v2095_v31 }
 0x213   : > { %v2042_v59 = vadd.f32 %v2038_v58, %v2026_v32  ;;  %v2128_v7 = vpop.permute.xlu1 %2127 }
 0x214   : > { %v2117_v41 = vadd.f32 %v2113_v12, %v2043_v45 }
 0x215   : > { %v2116_v47 = vadd.f32 %v2112_v49, %v2042_v59 }
 0x216   : > { %v2133_v35 = vadd.f32 %v2128_v7, %v2117_v41 }
 0x217   : > { %v2123_v44 = vpop.permute.xlu0 %2122  ;;  %v2132_v50 = vadd.f32 %v2128_v7, %v2116_v47 }
 0x218   : > { %v2130_v33 = vadd.f32 %v2123_v44, %v2114_v11  ;;  %2137 = vst [vmem:[%s433_s22 + $0x18] sm:$0xff] %v2133_v35 }
 0x219   : > { %2136 = vst [vmem:[%s433_s22 + $0x10] sm:$0xff] %v2132_v50 }
 0x21a   : > { %2134 = vst [vmem:[%s433_s22] sm:$0xff] %v2130_v33 }
 0x248   : > { %v2092_v26 = vpop.f32.mrf.mxu1 }
 0x249   : > { %v2111_v27 = vmul.f32 %v2103_v8, %v2092_v26 }
 0x24b   : > { %v2115_v0 = vadd.f32 %v2111_v27, %v2041_v40 }
 0x24d   : > { %v2131_v1 = vadd.f32 %v2123_v44, %v2115_v0 }
 0x24f   : > { %2135 = vst [vmem:[%s433_s22 + $0x8] sm:$0xff] %v2131_v1 }
 0x250   : > { %2466 = shalt.err (!%p2463_p3)
}
 0x251   : > { %s2505_s22 = smov 256   ;;  %s2506_s21 = smov 16  }
 0x252   : > { %2352 = dma.vmem_to_hbm [thread:$0]  (%p2615_p5), %s2152_s20, 512, %s2154_s15, %s2139_s0, %s2505_s22, %s2505_s22, %s2506_s21  }
 0x253 PF: > { %p2358_p4 = scmp.ge.s32.totalorder %s2501_s28, 2  ;;  %s2168_s23 = sand.u32 1, %s2489_s25  }
 0x254   : > { %s2169_s2 = scalar_lea.sflag [#allocation4], %s2168_s23 }
 0x255   : > { %p2355_p7 = pnand %p2358_p4, %p2619_p6 }
 0x257   : > { %p2356_p8 = pneg %p2355_p7 }
 0x259   : > { %2484 = dma.done.wait (%p2356_p8), %s2169_s2, 512  }
 0x25a   : > { %2486 = vsyncadd (%p2356_p8), %s2169_s2, 4294966784  ;;  %p23_p9 = scmp.ge.s32.totalorder %s2602_s14, 4   ;;  %s4183_s25 = smov %s2493_s26 }
 0x25b   : > { %s4184_s26 = smov %s2497_s27  ;;  %s4185_s27 = smov %s2613_s17 }
 0x25c   : > { %s4186_s28 = smov %s2602_s14  ;;  %25 = sbr.rel (!%p23_p9) target bundleno = 7 (0x7), region = 109 }
 0x261   :  { %2175 = vsyncpa [#allocation4], 1 }
 0x262   :  { %2177 = vsyncpa [#allocation4 + $0x1], 1 }

</bundles_post_ra>
